<compile_context>
chip_gen: v7x
topology: tpu7x:2x2x1
jax: 0.10.0
libtpu: 0.0.40
codegen_flags: <defaults>
</compile_context>

<pallas_src>
import math
import functools

import jax
import jax.numpy as jnp
from jax.experimental import pallas as pl
from jax.experimental.pallas import tpu as pltpu

EPS_LN = 1e-5    # nn.LayerNorm default
EPS_BN = 1e-5    # nn.BatchNorm1d default
OUT_LANES = 128  # pad the tiny output_dim up to one full lane tile for a dense store


def _vmem_specs(n):
    return [pl.BlockSpec(memory_space=pltpu.MemorySpace.VMEM) for _ in range(n)]


def _layer_norm(x, w, b):
    mu = jnp.mean(x, axis=-1, keepdims=True)
    var = jnp.mean((x - mu) ** 2, axis=-1, keepdims=True)
    return (x - mu) * jax.lax.rsqrt(var + EPS_LN) * w + b


# --------------------------- fully fused forward kernel ---------------------------
def fused_forward_kernel(x_ref, pe_ref, emb_w_ref, emb_b_ref,
                         wqkv_ref, bqkv_ref, wo_ref, bo_ref,
                         ln1w_ref, ln1b_ref, w1_ref, b1_ref, w2_ref, b2_ref,
                         ln2w_ref, ln2b_ref,
                         fc1w_ref, fc1b_ref, fc2w_ref, fc2b_ref,
                         o_ref, *, S, H, D, L):
    f32 = jnp.float32
    hd = D // H
    att_scale = 1.0 / math.sqrt(hd)

    # ---- embedding * sqrt(d_model) + positional encoding (already (S, D)) ----
    x = x_ref[...].astype(f32)                                             # (S, input_dim)
    h = jnp.dot(x, emb_w_ref[...], preferred_element_type=f32) + emb_b_ref[...]
    h = h * math.sqrt(D) + pe_ref[...]                                     # (S, D)

    def split_heads(m2d):
        # (S, D) -> (H, S, hd) via static lane slices (no data-transpose primitives)
        return jnp.stack([m2d[:, hh * hd:(hh + 1) * hd] for hh in range(H)], axis=0)

    # ---- num_layers x nn.TransformerEncoderLayer (post-norm, relu), statically unrolled ----
    for l in range(L):
        # fused Q/K/V projection: one wide matmul per layer
        qkv = jnp.dot(h, wqkv_ref[l], preferred_element_type=f32) + bqkv_ref[l]   # (S, 3D)
        q3 = split_heads(qkv[:, 0 * D:1 * D])                                     # (H, S, hd)
        k3 = split_heads(qkv[:, 1 * D:2 * D])
        v3 = split_heads(qkv[:, 2 * D:3 * D])

        # all heads at once
        s = jnp.einsum('hqd,hkd->hqk', q3, k3,
                       preferred_element_type=f32) * att_scale                    # (H, S, S)
        s = s - jnp.max(s, axis=-1, keepdims=True)
        p = jnp.exp(s)
        p = p / jnp.sum(p, axis=-1, keepdims=True)                                # exact softmax
        o3 = jnp.einsum('hqk,hkd->hqd', p, v3, preferred_element_type=f32)        # (H, S, hd)

        # merge heads along lanes, then ONE output projection matmul
        merged = jnp.concatenate([o3[hh] for hh in range(H)], axis=-1)            # (S, D)
        attn = jnp.dot(merged, wo_ref[l], preferred_element_type=f32) + bo_ref[l]

        # residual + LayerNorm1
        h = _layer_norm(h + attn, ln1w_ref[l], ln1b_ref[l])

        # feed-forward (relu)
        ff = jnp.dot(h, w1_ref[l], preferred_element_type=f32) + b1_ref[l]
        ff = jnp.maximum(ff, 0.0)
        ff = jnp.dot(ff, w2_ref[l], preferred_element_type=f32) + b2_ref[l]

        # residual + LayerNorm2
        h = _layer_norm(h + ff, ln2w_ref[l], ln2b_ref[l])

    # ---- head: fc1(+folded BN) -> (dropout=id) -> fc2 (lane-padded, dense store) ----
    z = jnp.dot(h, fc1w_ref[...], preferred_element_type=f32) + fc1b_ref[...]
    o_ref[...] = jnp.dot(z, fc2w_ref[...], preferred_element_type=f32) + fc2b_ref[...]


# --------------------------- wrapper ---------------------------
def transformer_network_forward(src, prep, *, d_model, nhead):
    S, B, input_dim = src.shape
    D, H = d_model, nhead
    L = prep["wqkv"].shape[0]
    out_lanes = prep["fc2_w"].shape[1]
    out_dim = prep["out_dim"]

    # output[:, -1, :] reads only the LAST batch element and the encoder has no cross-batch
    # interaction, so drop all other batch elements before the kernel (bit-identical result).
    x = src[:, B - 1, :].astype(jnp.float32)                               # (S, input_dim)

    # sinusoidal positional encoding for positions 0..S-1, shape (S, d_model)
    pos = jnp.arange(S, dtype=jnp.float32)[:, None]
    div = jnp.exp(jnp.arange(0, D, 2, dtype=jnp.float32) * (-math.log(10000.0) / D))
    pe = jnp.zeros((S, D), jnp.float32)
    pe = pe.at[:, 0::2].set(jnp.sin(pos * div))
    pe = pe.at[:, 1::2].set(jnp.cos(pos * div))

    kern = functools.partial(fused_forward_kernel, S=S, H=H, D=D, L=L)
    out_padded = pl.pallas_call(
        kern,
        out_shape=jax.ShapeDtypeStruct((S, out_lanes), jnp.float32),
        in_specs=_vmem_specs(20),
        out_specs=pl.BlockSpec(memory_space=pltpu.MemorySpace.VMEM),
    )(x, pe, prep["emb_w"], prep["emb_b"],
      prep["wqkv"], prep["bqkv"], prep["wo"], prep["bo"],
      prep["ln1_w"], prep["ln1_b"], prep["w1"], prep["b1"],
      prep["w2"], prep["b2"], prep["ln2_w"], prep["ln2_b"],
      prep["fc1_w"], prep["fc1_b"], prep["fc2_w"], prep["fc2_b"])

    return out_padded[:, :out_dim]


# --------------------------- host-side parameter preparation ---------------------------
def prepare_params(params, *, d_model, nhead, out_lanes=OUT_LANES):
    """Pre-transpose / stack weights and fold inference BatchNorm into fc1 (all host-side)."""
    del nhead  # heads are split inside the kernel by lane slices; weights stay lane-dense
    D = d_model
    layers = params["layers"]

    wqkv, bqkv, wo, bo = [], [], [], []
    ln1w, ln1b, w1, b1, w2, b2, ln2w, ln2b = [], [], [], [], [], [], [], []
    for layer in layers:
        wqkv.append(layer["wqkv"].T)       # (D, 3D), columns ordered [q | k | v]
        bqkv.append(layer["bqkv"])         # (1, 3D)
        wo.append(layer["wo"].T)           # (D, D): concat(heads) @ Wo^T
        bo.append(layer["bo"])             # (1, D)
        ln1w.append(layer["ln1_w"]); ln1b.append(layer["ln1_b"])
        w1.append(layer["w1"].T); b1.append(layer["b1"])
        w2.append(layer["w2"].T); b2.append(layer["b2"])
        ln2w.append(layer["ln2_w"]); ln2b.append(layer["ln2_b"])

    # fold inference-mode BatchNorm1d (running stats) into fc1
    bn_scale = params["bn_g"] / jnp.sqrt(params["bn_var"] + EPS_BN)               # (1, D)
    fc1_w = params["fc1_w"].T * bn_scale                                          # (D, D)
    fc1_b = (params["fc1_b"] - params["bn_mean"]) * bn_scale + params["bn_b"]     # (1, D)

    # pad fc2 to a full lane tile so the kernel's output store is lane-dense
    out_dim = params["fc2_w"].shape[0]
    fc2_w = jnp.zeros((D, out_lanes), jnp.float32).at[:, :out_dim].set(params["fc2_w"].T)
    fc2_b = jnp.zeros((1, out_lanes), jnp.float32).at[:, :out_dim].set(params["fc2_b"])

    return dict(
        emb_w=params["emb_w"].T, emb_b=params["emb_b"],
        wqkv=jnp.stack(wqkv), bqkv=jnp.stack(bqkv),
        wo=jnp.stack(wo), bo=jnp.stack(bo),
        ln1_w=jnp.stack(ln1w), ln1_b=jnp.stack(ln1b),
        w1=jnp.stack(w1), b1=jnp.stack(b1),
        w2=jnp.stack(w2), b2=jnp.stack(b2),
        ln2_w=jnp.stack(ln2w), ln2_b=jnp.stack(ln2b),
        fc1_w=fc1_w, fc1_b=fc1_b, fc2_w=fc2_w, fc2_b=fc2_b,
        out_dim=out_dim)


# --------------------------- deterministic PyTorch-layout parameter init ---------------------------
def init_params(key, input_dim, d_model, num_layers, dim_feedforward, output_dim):
    def dense(k, out_dim, in_dim):
        kw, kb = jax.random.split(k)
        bound = 1.0 / math.sqrt(in_dim)
        w = jax.random.uniform(kw, (out_dim, in_dim), jnp.float32, -bound, bound)
        b = jax.random.uniform(kb, (1, out_dim), jnp.float32, -bound, bound)
        return w, b

    keys = jax.random.split(key, 3 + num_layers)
    emb_w, emb_b = dense(keys[0], d_model, input_dim)
    fc1_w, fc1_b = dense(keys[1], d_model, d_model)
    fc2_w, fc2_b = dense(keys[2], output_dim, d_model)

    layers = []
    for i in range(num_layers):
        lk = jax.random.split(keys[3 + i], 4)
        wqkv, bqkv = dense(lk[0], 3 * d_model, d_model)
        wo, bo = dense(lk[1], d_model, d_model)
        w1, b1 = dense(lk[2], dim_feedforward, d_model)
        w2, b2 = dense(lk[3], d_model, dim_feedforward)
        layers.append(dict(
            wqkv=wqkv, bqkv=bqkv, wo=wo, bo=bo,
            ln1_w=jnp.ones((1, d_model), jnp.float32),
            ln1_b=jnp.zeros((1, d_model), jnp.float32),
            w1=w1, b1=b1, w2=w2, b2=b2,
            ln2_w=jnp.ones((1, d_model), jnp.float32),
            ln2_b=jnp.zeros((1, d_model), jnp.float32)))

    return dict(
        emb_w=emb_w, emb_b=emb_b, layers=layers,
        fc1_w=fc1_w, fc1_b=fc1_b,
        bn_g=jnp.ones((1, d_model), jnp.float32),
        bn_b=jnp.zeros((1, d_model), jnp.float32),
        bn_mean=jnp.zeros((1, d_model), jnp.float32),   # fresh BN running stats
        bn_var=jnp.ones((1, d_model), jnp.float32),
        fc2_w=fc2_w, fc2_b=fc2_b)


if __name__ == "__main__":
    # TransformerNetwork(input_dim=8, d_model=32, nhead=4, num_layers=2,
    #                    dim_feedforward=64, dropout_prob=0.5, output_dim=1)
    input_dim, d_model, nhead, num_layers, dim_ff, output_dim = 8, 32, 4, 2, 64, 1
    S, B = 8, 2   # seq (axis 0), batch (axis 1)

    root = jax.random.PRNGKey(0)
    k_params, k_src = jax.random.split(root)
    params = init_params(k_params, input_dim, d_model, num_layers, dim_ff, output_dim)
    prep = prepare_params(params, d_model=d_model, nhead=nhead)
    src = jax.random.normal(k_src, (S, B, input_dim), jnp.float32)

    out = transformer_network_forward(src, prep, d_model=d_model, nhead=nhead)
    out = jax.block_until_ready(out)
    assert out.shape == (S, output_dim), out.shape
    print("KERNEL_OK")
</pallas_src>

<mosaic_0001>
module attributes {stable_mosaic.version = 11 : i64} {
  func.func @fused_forward_kernel(%arg0: memref<8x8xf32, #tpu.memory_space<vmem>>, %arg1: memref<8x32xf32, #tpu.memory_space<vmem>>, %arg2: memref<8x32xf32, #tpu.memory_space<vmem>>, %arg3: memref<1x32xf32, #tpu.memory_space<vmem>>, %arg4: memref<2x32x96xf32, #tpu.memory_space<vmem>>, %arg5: memref<2x1x96xf32, #tpu.memory_space<vmem>>, %arg6: memref<2x32x32xf32, #tpu.memory_space<vmem>>, %arg7: memref<2x1x32xf32, #tpu.memory_space<vmem>>, %arg8: memref<2x1x32xf32, #tpu.memory_space<vmem>>, %arg9: memref<2x1x32xf32, #tpu.memory_space<vmem>>, %arg10: memref<2x32x64xf32, #tpu.memory_space<vmem>>, %arg11: memref<2x1x64xf32, #tpu.memory_space<vmem>>, %arg12: memref<2x64x32xf32, #tpu.memory_space<vmem>>, %arg13: memref<2x1x32xf32, #tpu.memory_space<vmem>>, %arg14: memref<2x1x32xf32, #tpu.memory_space<vmem>>, %arg15: memref<2x1x32xf32, #tpu.memory_space<vmem>>, %arg16: memref<32x32xf32, #tpu.memory_space<vmem>>, %arg17: memref<1x32xf32, #tpu.memory_space<vmem>>, %arg18: memref<32x128xf32, #tpu.memory_space<vmem>>, %arg19: memref<1x128xf32, #tpu.memory_space<vmem>>, %arg20: memref<8x128xf32, #tpu.memory_space<vmem>>) attributes {dimension_semantics = [], scalar_prefetch = 0 : i64, scratch_operands = 0 : i64, tpu.core_type = #tpu.core_type<tc>} {
    %c0 = arith.constant 0 : index
    %c0_0 = arith.constant 0 : index
    %0 = vector.load %arg0[%c0, %c0_0] : memref<8x8xf32, #tpu.memory_space<vmem>>, vector<8x8xf32>
    %c0_1 = arith.constant 0 : index
    %c0_2 = arith.constant 0 : index
    %1 = vector.load %arg2[%c0_1, %c0_2] : memref<8x32xf32, #tpu.memory_space<vmem>>, vector<8x32xf32>
    %cst = arith.constant dense<0.000000e+00> : vector<8x32xf32>
    %2 = tpu.matmul %0, %1, %cst {dimension_numbers = #tpu.dot_dimension_numbers<[1], [0], [0], [1], [0, 0, 1, 1], [], []>} : vector<8x8xf32>, vector<8x32xf32>, vector<8x32xf32> -> vector<8x32xf32>
    %c0_3 = arith.constant 0 : index
    %c0_4 = arith.constant 0 : index
    %3 = vector.load %arg3[%c0_3, %c0_4] : memref<1x32xf32, #tpu.memory_space<vmem>>, vector<1x32xf32>
    %4 = vector.broadcast %3 : vector<1x32xf32> to vector<8x32xf32>
    %5 = arith.addf %2, %4 : vector<8x32xf32>
    %cst_5 = arith.constant 5.65685415 : f32
    %6 = vector.broadcast %cst_5 : f32 to vector<8x32xf32>
    %7 = arith.mulf %5, %6 : vector<8x32xf32>
    %c0_6 = arith.constant 0 : index
    %c0_7 = arith.constant 0 : index
    %8 = vector.load %arg1[%c0_6, %c0_7] : memref<8x32xf32, #tpu.memory_space<vmem>>, vector<8x32xf32>
    %9 = arith.addf %7, %8 : vector<8x32xf32>
    %c0_8 = arith.constant 0 : index
    %c0_9 = arith.constant 0 : index
    %c0_10 = arith.constant 0 : index
    %10 = vector.load %arg4[%c0_8, %c0_9, %c0_10] : memref<2x32x96xf32, #tpu.memory_space<vmem>>, vector<1x32x96xf32>
    %11 = vector.shape_cast %10 : vector<1x32x96xf32> to vector<32x96xf32>
    %cst_11 = arith.constant dense<0.000000e+00> : vector<8x96xf32>
    %12 = tpu.matmul %9, %11, %cst_11 {dimension_numbers = #tpu.dot_dimension_numbers<[1], [0], [0], [1], [0, 0, 1, 1], [], []>} : vector<8x32xf32>, vector<32x96xf32>, vector<8x96xf32> -> vector<8x96xf32>
    %c0_12 = arith.constant 0 : index
    %c0_13 = arith.constant 0 : index
    %c0_14 = arith.constant 0 : index
    %13 = vector.load %arg5[%c0_12, %c0_13, %c0_14] : memref<2x1x96xf32, #tpu.memory_space<vmem>>, vector<1x1x96xf32>
    %14 = vector.shape_cast %13 : vector<1x1x96xf32> to vector<1x96xf32>
    %15 = vector.broadcast %14 : vector<1x96xf32> to vector<8x96xf32>
    %16 = arith.addf %12, %15 : vector<8x96xf32>
    %17 = vector.extract_strided_slice %16 {offsets = [0, 0], sizes = [8, 32], strides = [1, 1]} : vector<8x96xf32> to vector<8x32xf32>
    %18 = vector.extract_strided_slice %17 {offsets = [0, 0], sizes = [8, 8], strides = [1, 1]} : vector<8x32xf32> to vector<8x8xf32>
    %19 = vector.extract_strided_slice %17 {offsets = [0, 8], sizes = [8, 8], strides = [1, 1]} : vector<8x32xf32> to vector<8x8xf32>
    %20 = vector.extract_strided_slice %17 {offsets = [0, 16], sizes = [8, 8], strides = [1, 1]} : vector<8x32xf32> to vector<8x8xf32>
    %21 = vector.extract_strided_slice %17 {offsets = [0, 24], sizes = [8, 8], strides = [1, 1]} : vector<8x32xf32> to vector<8x8xf32>
    %22 = vector.shape_cast %18 : vector<8x8xf32> to vector<1x8x8xf32>
    %23 = vector.shape_cast %19 : vector<8x8xf32> to vector<1x8x8xf32>
    %24 = vector.shape_cast %20 : vector<8x8xf32> to vector<1x8x8xf32>
    %25 = vector.shape_cast %21 : vector<8x8xf32> to vector<1x8x8xf32>
    %26 = tpu.concatenate %22, %23, %24, %25 in 0 : vector<1x8x8xf32>, vector<1x8x8xf32>, vector<1x8x8xf32>, vector<1x8x8xf32> -> vector<4x8x8xf32>
    %27 = vector.extract_strided_slice %16 {offsets = [0, 32], sizes = [8, 32], strides = [1, 1]} : vector<8x96xf32> to vector<8x32xf32>
    %28 = vector.extract_strided_slice %27 {offsets = [0, 0], sizes = [8, 8], strides = [1, 1]} : vector<8x32xf32> to vector<8x8xf32>
    %29 = vector.extract_strided_slice %27 {offsets = [0, 8], sizes = [8, 8], strides = [1, 1]} : vector<8x32xf32> to vector<8x8xf32>
    %30 = vector.extract_strided_slice %27 {offsets = [0, 16], sizes = [8, 8], strides = [1, 1]} : vector<8x32xf32> to vector<8x8xf32>
    %31 = vector.extract_strided_slice %27 {offsets = [0, 24], sizes = [8, 8], strides = [1, 1]} : vector<8x32xf32> to vector<8x8xf32>
    %32 = vector.shape_cast %28 : vector<8x8xf32> to vector<1x8x8xf32>
    %33 = vector.shape_cast %29 : vector<8x8xf32> to vector<1x8x8xf32>
    %34 = vector.shape_cast %30 : vector<8x8xf32> to vector<1x8x8xf32>
    %35 = vector.shape_cast %31 : vector<8x8xf32> to vector<1x8x8xf32>
    %36 = tpu.concatenate %32, %33, %34, %35 in 0 : vector<1x8x8xf32>, vector<1x8x8xf32>, vector<1x8x8xf32>, vector<1x8x8xf32> -> vector<4x8x8xf32>
    %37 = vector.extract_strided_slice %16 {offsets = [0, 64], sizes = [8, 32], strides = [1, 1]} : vector<8x96xf32> to vector<8x32xf32>
    %38 = vector.extract_strided_slice %37 {offsets = [0, 0], sizes = [8, 8], strides = [1, 1]} : vector<8x32xf32> to vector<8x8xf32>
    %39 = vector.extract_strided_slice %37 {offsets = [0, 8], sizes = [8, 8], strides = [1, 1]} : vector<8x32xf32> to vector<8x8xf32>
    %40 = vector.extract_strided_slice %37 {offsets = [0, 16], sizes = [8, 8], strides = [1, 1]} : vector<8x32xf32> to vector<8x8xf32>
    %41 = vector.extract_strided_slice %37 {offsets = [0, 24], sizes = [8, 8], strides = [1, 1]} : vector<8x32xf32> to vector<8x8xf32>
    %42 = vector.shape_cast %38 : vector<8x8xf32> to vector<1x8x8xf32>
    %43 = vector.shape_cast %39 : vector<8x8xf32> to vector<1x8x8xf32>
    %44 = vector.shape_cast %40 : vector<8x8xf32> to vector<1x8x8xf32>
    %45 = vector.shape_cast %41 : vector<8x8xf32> to vector<1x8x8xf32>
    %46 = tpu.concatenate %42, %43, %44, %45 in 0 : vector<1x8x8xf32>, vector<1x8x8xf32>, vector<1x8x8xf32>, vector<1x8x8xf32> -> vector<4x8x8xf32>
    "tpu.trace_start"() <{level = 10 : i32, message = "hqd,hkd->hqk"}> : () -> ()
    %cst_15 = arith.constant dense<0.000000e+00> : vector<4x8x8xf32>
    %47 = tpu.matmul %26, %36, %cst_15 {dimension_numbers = #tpu.dot_dimension_numbers<[2], [2], [1], [1], [0, 0, 0, 1, 1, 1], [0], [0]>} : vector<4x8x8xf32>, vector<4x8x8xf32>, vector<4x8x8xf32> -> vector<4x8x8xf32>
    "tpu.trace_stop"() : () -> ()
    %cst_16 = arith.constant 0.353553385 : f32
    %48 = vector.broadcast %cst_16 : f32 to vector<4x8x8xf32>
    %49 = arith.mulf %47, %48 : vector<4x8x8xf32>
    %cst_17 = arith.constant dense<0xFF800000> : vector<4x8xf32>
    %50 = vector.multi_reduction <maximumf>, %49, %cst_17 [2] : vector<4x8x8xf32> to vector<4x8xf32>
    %51 = vector.shape_cast %50 : vector<4x8xf32> to vector<4x8x1xf32>
    %52 = vector.broadcast %51 : vector<4x8x1xf32> to vector<4x8x8xf32>
    %53 = arith.subf %49, %52 : vector<4x8x8xf32>
    %54 = math.exp %53 : vector<4x8x8xf32>
    %cst_18 = arith.constant dense<0.000000e+00> : vector<4x8xf32>
    %55 = vector.multi_reduction <add>, %54, %cst_18 [2] : vector<4x8x8xf32> to vector<4x8xf32>
    %56 = vector.shape_cast %55 : vector<4x8xf32> to vector<4x8x1xf32>
    %57 = vector.broadcast %56 : vector<4x8x1xf32> to vector<4x8x8xf32>
    %58 = arith.divf %54, %57 : vector<4x8x8xf32>
    "tpu.trace_start"() <{level = 10 : i32, message = "hqk,hkd->hqd"}> : () -> ()
    %cst_19 = arith.constant dense<0.000000e+00> : vector<4x8x8xf32>
    %59 = tpu.matmul %58, %46, %cst_19 {dimension_numbers = #tpu.dot_dimension_numbers<[2], [1], [1], [2], [0, 0, 0, 1, 1, 2], [0], [0]>} : vector<4x8x8xf32>, vector<4x8x8xf32>, vector<4x8x8xf32> -> vector<4x8x8xf32>
    "tpu.trace_stop"() : () -> ()
    %60 = vector.extract_strided_slice %59 {offsets = [0, 0, 0], sizes = [1, 8, 8], strides = [1, 1, 1]} : vector<4x8x8xf32> to vector<1x8x8xf32>
    %61 = vector.shape_cast %60 : vector<1x8x8xf32> to vector<8x8xf32>
    %62 = vector.extract_strided_slice %59 {offsets = [1, 0, 0], sizes = [1, 8, 8], strides = [1, 1, 1]} : vector<4x8x8xf32> to vector<1x8x8xf32>
    %63 = vector.shape_cast %62 : vector<1x8x8xf32> to vector<8x8xf32>
    %64 = vector.extract_strided_slice %59 {offsets = [2, 0, 0], sizes = [1, 8, 8], strides = [1, 1, 1]} : vector<4x8x8xf32> to vector<1x8x8xf32>
    %65 = vector.shape_cast %64 : vector<1x8x8xf32> to vector<8x8xf32>
    %66 = vector.extract_strided_slice %59 {offsets = [3, 0, 0], sizes = [1, 8, 8], strides = [1, 1, 1]} : vector<4x8x8xf32> to vector<1x8x8xf32>
    %67 = vector.shape_cast %66 : vector<1x8x8xf32> to vector<8x8xf32>
    %68 = tpu.concatenate %61, %63, %65, %67 in 1 : vector<8x8xf32>, vector<8x8xf32>, vector<8x8xf32>, vector<8x8xf32> -> vector<8x32xf32>
    %c0_20 = arith.constant 0 : index
    %c0_21 = arith.constant 0 : index
    %c0_22 = arith.constant 0 : index
    %69 = vector.load %arg6[%c0_20, %c0_21, %c0_22] : memref<2x32x32xf32, #tpu.memory_space<vmem>>, vector<1x32x32xf32>
    %70 = vector.shape_cast %69 : vector<1x32x32xf32> to vector<32x32xf32>
    %cst_23 = arith.constant dense<0.000000e+00> : vector<8x32xf32>
    %71 = tpu.matmul %68, %70, %cst_23 {dimension_numbers = #tpu.dot_dimension_numbers<[1], [0], [0], [1], [0, 0, 1, 1], [], []>} : vector<8x32xf32>, vector<32x32xf32>, vector<8x32xf32> -> vector<8x32xf32>
    %c0_24 = arith.constant 0 : index
    %c0_25 = arith.constant 0 : index
    %c0_26 = arith.constant 0 : index
    %72 = vector.load %arg7[%c0_24, %c0_25, %c0_26] : memref<2x1x32xf32, #tpu.memory_space<vmem>>, vector<1x1x32xf32>
    %73 = vector.shape_cast %72 : vector<1x1x32xf32> to vector<1x32xf32>
    %74 = vector.broadcast %73 : vector<1x32xf32> to vector<8x32xf32>
    %75 = arith.addf %71, %74 : vector<8x32xf32>
    %76 = arith.addf %9, %75 : vector<8x32xf32>
    %c0_27 = arith.constant 0 : index
    %c0_28 = arith.constant 0 : index
    %c0_29 = arith.constant 0 : index
    %77 = vector.load %arg8[%c0_27, %c0_28, %c0_29] : memref<2x1x32xf32, #tpu.memory_space<vmem>>, vector<1x1x32xf32>
    %78 = vector.shape_cast %77 : vector<1x1x32xf32> to vector<1x32xf32>
    %c0_30 = arith.constant 0 : index
    %c0_31 = arith.constant 0 : index
    %c0_32 = arith.constant 0 : index
    %79 = vector.load %arg9[%c0_30, %c0_31, %c0_32] : memref<2x1x32xf32, #tpu.memory_space<vmem>>, vector<1x1x32xf32>
    %80 = vector.shape_cast %79 : vector<1x1x32xf32> to vector<1x32xf32>
    %cst_33 = arith.constant dense<0.000000e+00> : vector<8xf32>
    %81 = vector.multi_reduction <add>, %76, %cst_33 [1] : vector<8x32xf32> to vector<8xf32>
    %82 = vector.shape_cast %81 : vector<8xf32> to vector<8x1xf32>
    %cst_34 = arith.constant 3.200000e+01 : f32
    %83 = vector.broadcast %cst_34 : f32 to vector<8x1xf32>
    %84 = arith.divf %82, %83 : vector<8x1xf32>
    %85 = vector.broadcast %84 : vector<8x1xf32> to vector<8x32xf32>
    %86 = arith.subf %76, %85 : vector<8x32xf32>
    %87 = arith.mulf %86, %86 : vector<8x32xf32>
    %cst_35 = arith.constant dense<0.000000e+00> : vector<8xf32>
    %88 = vector.multi_reduction <add>, %87, %cst_35 [1] : vector<8x32xf32> to vector<8xf32>
    %89 = vector.shape_cast %88 : vector<8xf32> to vector<8x1xf32>
    %cst_36 = arith.constant 3.200000e+01 : f32
    %90 = vector.broadcast %cst_36 : f32 to vector<8x1xf32>
    %91 = arith.divf %89, %90 : vector<8x1xf32>
    %92 = vector.broadcast %84 : vector<8x1xf32> to vector<8x32xf32>
    %93 = arith.subf %76, %92 : vector<8x32xf32>
    %cst_37 = arith.constant 9.99999974E-6 : f32
    %94 = vector.broadcast %cst_37 : f32 to vector<8x1xf32>
    %95 = arith.addf %91, %94 : vector<8x1xf32>
    %96 = math.rsqrt %95 : vector<8x1xf32>
    %97 = vector.broadcast %96 : vector<8x1xf32> to vector<8x32xf32>
    %98 = arith.mulf %93, %97 : vector<8x32xf32>
    %99 = vector.broadcast %78 : vector<1x32xf32> to vector<8x32xf32>
    %100 = arith.mulf %98, %99 : vector<8x32xf32>
    %101 = vector.broadcast %80 : vector<1x32xf32> to vector<8x32xf32>
    %102 = arith.addf %100, %101 : vector<8x32xf32>
    %c0_38 = arith.constant 0 : index
    %c0_39 = arith.constant 0 : index
    %c0_40 = arith.constant 0 : index
    %103 = vector.load %arg10[%c0_38, %c0_39, %c0_40] : memref<2x32x64xf32, #tpu.memory_space<vmem>>, vector<1x32x64xf32>
    %104 = vector.shape_cast %103 : vector<1x32x64xf32> to vector<32x64xf32>
    %cst_41 = arith.constant dense<0.000000e+00> : vector<8x64xf32>
    %105 = tpu.matmul %102, %104, %cst_41 {dimension_numbers = #tpu.dot_dimension_numbers<[1], [0], [0], [1], [0, 0, 1, 1], [], []>} : vector<8x32xf32>, vector<32x64xf32>, vector<8x64xf32> -> vector<8x64xf32>
    %c0_42 = arith.constant 0 : index
    %c0_43 = arith.constant 0 : index
    %c0_44 = arith.constant 0 : index
    %106 = vector.load %arg11[%c0_42, %c0_43, %c0_44] : memref<2x1x64xf32, #tpu.memory_space<vmem>>, vector<1x1x64xf32>
    %107 = vector.shape_cast %106 : vector<1x1x64xf32> to vector<1x64xf32>
    %108 = vector.broadcast %107 : vector<1x64xf32> to vector<8x64xf32>
    %109 = arith.addf %105, %108 : vector<8x64xf32>
    %cst_45 = arith.constant 0.000000e+00 : f32
    %110 = vector.broadcast %cst_45 : f32 to vector<8x64xf32>
    %111 = arith.maximumf %109, %110 : vector<8x64xf32>
    %c0_46 = arith.constant 0 : index
    %c0_47 = arith.constant 0 : index
    %c0_48 = arith.constant 0 : index
    %112 = vector.load %arg12[%c0_46, %c0_47, %c0_48] : memref<2x64x32xf32, #tpu.memory_space<vmem>>, vector<1x64x32xf32>
    %113 = vector.shape_cast %112 : vector<1x64x32xf32> to vector<64x32xf32>
    %cst_49 = arith.constant dense<0.000000e+00> : vector<8x32xf32>
    %114 = tpu.matmul %111, %113, %cst_49 {dimension_numbers = #tpu.dot_dimension_numbers<[1], [0], [0], [1], [0, 0, 1, 1], [], []>} : vector<8x64xf32>, vector<64x32xf32>, vector<8x32xf32> -> vector<8x32xf32>
    %c0_50 = arith.constant 0 : index
    %c0_51 = arith.constant 0 : index
    %c0_52 = arith.constant 0 : index
    %115 = vector.load %arg13[%c0_50, %c0_51, %c0_52] : memref<2x1x32xf32, #tpu.memory_space<vmem>>, vector<1x1x32xf32>
    %116 = vector.shape_cast %115 : vector<1x1x32xf32> to vector<1x32xf32>
    %117 = vector.broadcast %116 : vector<1x32xf32> to vector<8x32xf32>
    %118 = arith.addf %114, %117 : vector<8x32xf32>
    %119 = arith.addf %102, %118 : vector<8x32xf32>
    %c0_53 = arith.constant 0 : index
    %c0_54 = arith.constant 0 : index
    %c0_55 = arith.constant 0 : index
    %120 = vector.load %arg14[%c0_53, %c0_54, %c0_55] : memref<2x1x32xf32, #tpu.memory_space<vmem>>, vector<1x1x32xf32>
    %121 = vector.shape_cast %120 : vector<1x1x32xf32> to vector<1x32xf32>
    %c0_56 = arith.constant 0 : index
    %c0_57 = arith.constant 0 : index
    %c0_58 = arith.constant 0 : index
    %122 = vector.load %arg15[%c0_56, %c0_57, %c0_58] : memref<2x1x32xf32, #tpu.memory_space<vmem>>, vector<1x1x32xf32>
    %123 = vector.shape_cast %122 : vector<1x1x32xf32> to vector<1x32xf32>
    %cst_59 = arith.constant dense<0.000000e+00> : vector<8xf32>
    %124 = vector.multi_reduction <add>, %119, %cst_59 [1] : vector<8x32xf32> to vector<8xf32>
    %125 = vector.shape_cast %124 : vector<8xf32> to vector<8x1xf32>
    %cst_60 = arith.constant 3.200000e+01 : f32
    %126 = vector.broadcast %cst_60 : f32 to vector<8x1xf32>
    %127 = arith.divf %125, %126 : vector<8x1xf32>
    %128 = vector.broadcast %127 : vector<8x1xf32> to vector<8x32xf32>
    %129 = arith.subf %119, %128 : vector<8x32xf32>
    %130 = arith.mulf %129, %129 : vector<8x32xf32>
    %cst_61 = arith.constant dense<0.000000e+00> : vector<8xf32>
    %131 = vector.multi_reduction <add>, %130, %cst_61 [1] : vector<8x32xf32> to vector<8xf32>
    %132 = vector.shape_cast %131 : vector<8xf32> to vector<8x1xf32>
    %cst_62 = arith.constant 3.200000e+01 : f32
    %133 = vector.broadcast %cst_62 : f32 to vector<8x1xf32>
    %134 = arith.divf %132, %133 : vector<8x1xf32>
    %135 = vector.broadcast %127 : vector<8x1xf32> to vector<8x32xf32>
    %136 = arith.subf %119, %135 : vector<8x32xf32>
    %cst_63 = arith.constant 9.99999974E-6 : f32
    %137 = vector.broadcast %cst_63 : f32 to vector<8x1xf32>
    %138 = arith.addf %134, %137 : vector<8x1xf32>
    %139 = math.rsqrt %138 : vector<8x1xf32>
    %140 = vector.broadcast %139 : vector<8x1xf32> to vector<8x32xf32>
    %141 = arith.mulf %136, %140 : vector<8x32xf32>
    %142 = vector.broadcast %121 : vector<1x32xf32> to vector<8x32xf32>
    %143 = arith.mulf %141, %142 : vector<8x32xf32>
    %144 = vector.broadcast %123 : vector<1x32xf32> to vector<8x32xf32>
    %145 = arith.addf %143, %144 : vector<8x32xf32>
    %c1 = arith.constant 1 : index
    %c0_64 = arith.constant 0 : index
    %c0_65 = arith.constant 0 : index
    %146 = vector.load %arg4[%c1, %c0_64, %c0_65] : memref<2x32x96xf32, #tpu.memory_space<vmem>>, vector<1x32x96xf32>
    %147 = vector.shape_cast %146 : vector<1x32x96xf32> to vector<32x96xf32>
    %cst_66 = arith.constant dense<0.000000e+00> : vector<8x96xf32>
    %148 = tpu.matmul %145, %147, %cst_66 {dimension_numbers = #tpu.dot_dimension_numbers<[1], [0], [0], [1], [0, 0, 1, 1], [], []>} : vector<8x32xf32>, vector<32x96xf32>, vector<8x96xf32> -> vector<8x96xf32>
    %c1_67 = arith.constant 1 : index
    %c0_68 = arith.constant 0 : index
    %c0_69 = arith.constant 0 : index
    %149 = vector.load %arg5[%c1_67, %c0_68, %c0_69] : memref<2x1x96xf32, #tpu.memory_space<vmem>>, vector<1x1x96xf32>
    %150 = vector.shape_cast %149 : vector<1x1x96xf32> to vector<1x96xf32>
    %151 = vector.broadcast %150 : vector<1x96xf32> to vector<8x96xf32>
    %152 = arith.addf %148, %151 : vector<8x96xf32>
    %153 = vector.extract_strided_slice %152 {offsets = [0, 0], sizes = [8, 32], strides = [1, 1]} : vector<8x96xf32> to vector<8x32xf32>
    %154 = vector.extract_strided_slice %153 {offsets = [0, 0], sizes = [8, 8], strides = [1, 1]} : vector<8x32xf32> to vector<8x8xf32>
    %155 = vector.extract_strided_slice %153 {offsets = [0, 8], sizes = [8, 8], strides = [1, 1]} : vector<8x32xf32> to vector<8x8xf32>
    %156 = vector.extract_strided_slice %153 {offsets = [0, 16], sizes = [8, 8], strides = [1, 1]} : vector<8x32xf32> to vector<8x8xf32>
    %157 = vector.extract_strided_slice %153 {offsets = [0, 24], sizes = [8, 8], strides = [1, 1]} : vector<8x32xf32> to vector<8x8xf32>
    %158 = vector.shape_cast %154 : vector<8x8xf32> to vector<1x8x8xf32>
    %159 = vector.shape_cast %155 : vector<8x8xf32> to vector<1x8x8xf32>
    %160 = vector.shape_cast %156 : vector<8x8xf32> to vector<1x8x8xf32>
    %161 = vector.shape_cast %157 : vector<8x8xf32> to vector<1x8x8xf32>
    %162 = tpu.concatenate %158, %159, %160, %161 in 0 : vector<1x8x8xf32>, vector<1x8x8xf32>, vector<1x8x8xf32>, vector<1x8x8xf32> -> vector<4x8x8xf32>
    %163 = vector.extract_strided_slice %152 {offsets = [0, 32], sizes = [8, 32], strides = [1, 1]} : vector<8x96xf32> to vector<8x32xf32>
    %164 = vector.extract_strided_slice %163 {offsets = [0, 0], sizes = [8, 8], strides = [1, 1]} : vector<8x32xf32> to vector<8x8xf32>
    %165 = vector.extract_strided_slice %163 {offsets = [0, 8], sizes = [8, 8], strides = [1, 1]} : vector<8x32xf32> to vector<8x8xf32>
    %166 = vector.extract_strided_slice %163 {offsets = [0, 16], sizes = [8, 8], strides = [1, 1]} : vector<8x32xf32> to vector<8x8xf32>
    %167 = vector.extract_strided_slice %163 {offsets = [0, 24], sizes = [8, 8], strides = [1, 1]} : vector<8x32xf32> to vector<8x8xf32>
    %168 = vector.shape_cast %164 : vector<8x8xf32> to vector<1x8x8xf32>
    %169 = vector.shape_cast %165 : vector<8x8xf32> to vector<1x8x8xf32>
    %170 = vector.shape_cast %166 : vector<8x8xf32> to vector<1x8x8xf32>
    %171 = vector.shape_cast %167 : vector<8x8xf32> to vector<1x8x8xf32>
    %172 = tpu.concatenate %168, %169, %170, %171 in 0 : vector<1x8x8xf32>, vector<1x8x8xf32>, vector<1x8x8xf32>, vector<1x8x8xf32> -> vector<4x8x8xf32>
    %173 = vector.extract_strided_slice %152 {offsets = [0, 64], sizes = [8, 32], strides = [1, 1]} : vector<8x96xf32> to vector<8x32xf32>
    %174 = vector.extract_strided_slice %173 {offsets = [0, 0], sizes = [8, 8], strides = [1, 1]} : vector<8x32xf32> to vector<8x8xf32>
    %175 = vector.extract_strided_slice %173 {offsets = [0, 8], sizes = [8, 8], strides = [1, 1]} : vector<8x32xf32> to vector<8x8xf32>
    %176 = vector.extract_strided_slice %173 {offsets = [0, 16], sizes = [8, 8], strides = [1, 1]} : vector<8x32xf32> to vector<8x8xf32>
    %177 = vector.extract_strided_slice %173 {offsets = [0, 24], sizes = [8, 8], strides = [1, 1]} : vector<8x32xf32> to vector<8x8xf32>
    %178 = vector.shape_cast %174 : vector<8x8xf32> to vector<1x8x8xf32>
    %179 = vector.shape_cast %175 : vector<8x8xf32> to vector<1x8x8xf32>
    %180 = vector.shape_cast %176 : vector<8x8xf32> to vector<1x8x8xf32>
    %181 = vector.shape_cast %177 : vector<8x8xf32> to vector<1x8x8xf32>
    %182 = tpu.concatenate %178, %179, %180, %181 in 0 : vector<1x8x8xf32>, vector<1x8x8xf32>, vector<1x8x8xf32>, vector<1x8x8xf32> -> vector<4x8x8xf32>
    "tpu.trace_start"() <{level = 10 : i32, message = "hqd,hkd->hqk"}> : () -> ()
    %cst_70 = arith.constant dense<0.000000e+00> : vector<4x8x8xf32>
    %183 = tpu.matmul %162, %172, %cst_70 {dimension_numbers = #tpu.dot_dimension_numbers<[2], [2], [1], [1], [0, 0, 0, 1, 1, 1], [0], [0]>} : vector<4x8x8xf32>, vector<4x8x8xf32>, vector<4x8x8xf32> -> vector<4x8x8xf32>
    "tpu.trace_stop"() : () -> ()
    %cst_71 = arith.constant 0.353553385 : f32
    %184 = vector.broadcast %cst_71 : f32 to vector<4x8x8xf32>
    %185 = arith.mulf %183, %184 : vector<4x8x8xf32>
    %cst_72 = arith.constant dense<0xFF800000> : vector<4x8xf32>
    %186 = vector.multi_reduction <maximumf>, %185, %cst_72 [2] : vector<4x8x8xf32> to vector<4x8xf32>
    %187 = vector.shape_cast %186 : vector<4x8xf32> to vector<4x8x1xf32>
    %188 = vector.broadcast %187 : vector<4x8x1xf32> to vector<4x8x8xf32>
    %189 = arith.subf %185, %188 : vector<4x8x8xf32>
    %190 = math.exp %189 : vector<4x8x8xf32>
    %cst_73 = arith.constant dense<0.000000e+00> : vector<4x8xf32>
    %191 = vector.multi_reduction <add>, %190, %cst_73 [2] : vector<4x8x8xf32> to vector<4x8xf32>
    %192 = vector.shape_cast %191 : vector<4x8xf32> to vector<4x8x1xf32>
    %193 = vector.broadcast %192 : vector<4x8x1xf32> to vector<4x8x8xf32>
    %194 = arith.divf %190, %193 : vector<4x8x8xf32>
    "tpu.trace_start"() <{level = 10 : i32, message = "hqk,hkd->hqd"}> : () -> ()
    %cst_74 = arith.constant dense<0.000000e+00> : vector<4x8x8xf32>
    %195 = tpu.matmul %194, %182, %cst_74 {dimension_numbers = #tpu.dot_dimension_numbers<[2], [1], [1], [2], [0, 0, 0, 1, 1, 2], [0], [0]>} : vector<4x8x8xf32>, vector<4x8x8xf32>, vector<4x8x8xf32> -> vector<4x8x8xf32>
    "tpu.trace_stop"() : () -> ()
    %196 = vector.extract_strided_slice %195 {offsets = [0, 0, 0], sizes = [1, 8, 8], strides = [1, 1, 1]} : vector<4x8x8xf32> to vector<1x8x8xf32>
    %197 = vector.shape_cast %196 : vector<1x8x8xf32> to vector<8x8xf32>
    %198 = vector.extract_strided_slice %195 {offsets = [1, 0, 0], sizes = [1, 8, 8], strides = [1, 1, 1]} : vector<4x8x8xf32> to vector<1x8x8xf32>
    %199 = vector.shape_cast %198 : vector<1x8x8xf32> to vector<8x8xf32>
    %200 = vector.extract_strided_slice %195 {offsets = [2, 0, 0], sizes = [1, 8, 8], strides = [1, 1, 1]} : vector<4x8x8xf32> to vector<1x8x8xf32>
    %201 = vector.shape_cast %200 : vector<1x8x8xf32> to vector<8x8xf32>
    %202 = vector.extract_strided_slice %195 {offsets = [3, 0, 0], sizes = [1, 8, 8], strides = [1, 1, 1]} : vector<4x8x8xf32> to vector<1x8x8xf32>
    %203 = vector.shape_cast %202 : vector<1x8x8xf32> to vector<8x8xf32>
    %204 = tpu.concatenate %197, %199, %201, %203 in 1 : vector<8x8xf32>, vector<8x8xf32>, vector<8x8xf32>, vector<8x8xf32> -> vector<8x32xf32>
    %c1_75 = arith.constant 1 : index
    %c0_76 = arith.constant 0 : index
    %c0_77 = arith.constant 0 : index
    %205 = vector.load %arg6[%c1_75, %c0_76, %c0_77] : memref<2x32x32xf32, #tpu.memory_space<vmem>>, vector<1x32x32xf32>
    %206 = vector.shape_cast %205 : vector<1x32x32xf32> to vector<32x32xf32>
    %cst_78 = arith.constant dense<0.000000e+00> : vector<8x32xf32>
    %207 = tpu.matmul %204, %206, %cst_78 {dimension_numbers = #tpu.dot_dimension_numbers<[1], [0], [0], [1], [0, 0, 1, 1], [], []>} : vector<8x32xf32>, vector<32x32xf32>, vector<8x32xf32> -> vector<8x32xf32>
    %c1_79 = arith.constant 1 : index
    %c0_80 = arith.constant 0 : index
    %c0_81 = arith.constant 0 : index
    %208 = vector.load %arg7[%c1_79, %c0_80, %c0_81] : memref<2x1x32xf32, #tpu.memory_space<vmem>>, vector<1x1x32xf32>
    %209 = vector.shape_cast %208 : vector<1x1x32xf32> to vector<1x32xf32>
    %210 = vector.broadcast %209 : vector<1x32xf32> to vector<8x32xf32>
    %211 = arith.addf %207, %210 : vector<8x32xf32>
    %212 = arith.addf %145, %211 : vector<8x32xf32>
    %c1_82 = arith.constant 1 : index
    %c0_83 = arith.constant 0 : index
    %c0_84 = arith.constant 0 : index
    %213 = vector.load %arg8[%c1_82, %c0_83, %c0_84] : memref<2x1x32xf32, #tpu.memory_space<vmem>>, vector<1x1x32xf32>
    %214 = vector.shape_cast %213 : vector<1x1x32xf32> to vector<1x32xf32>
    %c1_85 = arith.constant 1 : index
    %c0_86 = arith.constant 0 : index
    %c0_87 = arith.constant 0 : index
    %215 = vector.load %arg9[%c1_85, %c0_86, %c0_87] : memref<2x1x32xf32, #tpu.memory_space<vmem>>, vector<1x1x32xf32>
    %216 = vector.shape_cast %215 : vector<1x1x32xf32> to vector<1x32xf32>
    %cst_88 = arith.constant dense<0.000000e+00> : vector<8xf32>
    %217 = vector.multi_reduction <add>, %212, %cst_88 [1] : vector<8x32xf32> to vector<8xf32>
    %218 = vector.shape_cast %217 : vector<8xf32> to vector<8x1xf32>
    %cst_89 = arith.constant 3.200000e+01 : f32
    %219 = vector.broadcast %cst_89 : f32 to vector<8x1xf32>
    %220 = arith.divf %218, %219 : vector<8x1xf32>
    %221 = vector.broadcast %220 : vector<8x1xf32> to vector<8x32xf32>
    %222 = arith.subf %212, %221 : vector<8x32xf32>
    %223 = arith.mulf %222, %222 : vector<8x32xf32>
    %cst_90 = arith.constant dense<0.000000e+00> : vector<8xf32>
    %224 = vector.multi_reduction <add>, %223, %cst_90 [1] : vector<8x32xf32> to vector<8xf32>
    %225 = vector.shape_cast %224 : vector<8xf32> to vector<8x1xf32>
    %cst_91 = arith.constant 3.200000e+01 : f32
    %226 = vector.broadcast %cst_91 : f32 to vector<8x1xf32>
    %227 = arith.divf %225, %226 : vector<8x1xf32>
    %228 = vector.broadcast %220 : vector<8x1xf32> to vector<8x32xf32>
    %229 = arith.subf %212, %228 : vector<8x32xf32>
    %cst_92 = arith.constant 9.99999974E-6 : f32
    %230 = vector.broadcast %cst_92 : f32 to vector<8x1xf32>
    %231 = arith.addf %227, %230 : vector<8x1xf32>
    %232 = math.rsqrt %231 : vector<8x1xf32>
    %233 = vector.broadcast %232 : vector<8x1xf32> to vector<8x32xf32>
    %234 = arith.mulf %229, %233 : vector<8x32xf32>
    %235 = vector.broadcast %214 : vector<1x32xf32> to vector<8x32xf32>
    %236 = arith.mulf %234, %235 : vector<8x32xf32>
    %237 = vector.broadcast %216 : vector<1x32xf32> to vector<8x32xf32>
    %238 = arith.addf %236, %237 : vector<8x32xf32>
    %c1_93 = arith.constant 1 : index
    %c0_94 = arith.constant 0 : index
    %c0_95 = arith.constant 0 : index
    %239 = vector.load %arg10[%c1_93, %c0_94, %c0_95] : memref<2x32x64xf32, #tpu.memory_space<vmem>>, vector<1x32x64xf32>
    %240 = vector.shape_cast %239 : vector<1x32x64xf32> to vector<32x64xf32>
    %cst_96 = arith.constant dense<0.000000e+00> : vector<8x64xf32>
    %241 = tpu.matmul %238, %240, %cst_96 {dimension_numbers = #tpu.dot_dimension_numbers<[1], [0], [0], [1], [0, 0, 1, 1], [], []>} : vector<8x32xf32>, vector<32x64xf32>, vector<8x64xf32> -> vector<8x64xf32>
    %c1_97 = arith.constant 1 : index
    %c0_98 = arith.constant 0 : index
    %c0_99 = arith.constant 0 : index
    %242 = vector.load %arg11[%c1_97, %c0_98, %c0_99] : memref<2x1x64xf32, #tpu.memory_space<vmem>>, vector<1x1x64xf32>
    %243 = vector.shape_cast %242 : vector<1x1x64xf32> to vector<1x64xf32>
    %244 = vector.broadcast %243 : vector<1x64xf32> to vector<8x64xf32>
    %245 = arith.addf %241, %244 : vector<8x64xf32>
    %cst_100 = arith.constant 0.000000e+00 : f32
    %246 = vector.broadcast %cst_100 : f32 to vector<8x64xf32>
    %247 = arith.maximumf %245, %246 : vector<8x64xf32>
    %c1_101 = arith.constant 1 : index
    %c0_102 = arith.constant 0 : index
    %c0_103 = arith.constant 0 : index
    %248 = vector.load %arg12[%c1_101, %c0_102, %c0_103] : memref<2x64x32xf32, #tpu.memory_space<vmem>>, vector<1x64x32xf32>
    %249 = vector.shape_cast %248 : vector<1x64x32xf32> to vector<64x32xf32>
    %cst_104 = arith.constant dense<0.000000e+00> : vector<8x32xf32>
    %250 = tpu.matmul %247, %249, %cst_104 {dimension_numbers = #tpu.dot_dimension_numbers<[1], [0], [0], [1], [0, 0, 1, 1], [], []>} : vector<8x64xf32>, vector<64x32xf32>, vector<8x32xf32> -> vector<8x32xf32>
    %c1_105 = arith.constant 1 : index
    %c0_106 = arith.constant 0 : index
    %c0_107 = arith.constant 0 : index
    %251 = vector.load %arg13[%c1_105, %c0_106, %c0_107] : memref<2x1x32xf32, #tpu.memory_space<vmem>>, vector<1x1x32xf32>
    %252 = vector.shape_cast %251 : vector<1x1x32xf32> to vector<1x32xf32>
    %253 = vector.broadcast %252 : vector<1x32xf32> to vector<8x32xf32>
    %254 = arith.addf %250, %253 : vector<8x32xf32>
    %255 = arith.addf %238, %254 : vector<8x32xf32>
    %c1_108 = arith.constant 1 : index
    %c0_109 = arith.constant 0 : index
    %c0_110 = arith.constant 0 : index
    %256 = vector.load %arg14[%c1_108, %c0_109, %c0_110] : memref<2x1x32xf32, #tpu.memory_space<vmem>>, vector<1x1x32xf32>
    %257 = vector.shape_cast %256 : vector<1x1x32xf32> to vector<1x32xf32>
    %c1_111 = arith.constant 1 : index
    %c0_112 = arith.constant 0 : index
    %c0_113 = arith.constant 0 : index
    %258 = vector.load %arg15[%c1_111, %c0_112, %c0_113] : memref<2x1x32xf32, #tpu.memory_space<vmem>>, vector<1x1x32xf32>
    %259 = vector.shape_cast %258 : vector<1x1x32xf32> to vector<1x32xf32>
    %cst_114 = arith.constant dense<0.000000e+00> : vector<8xf32>
    %260 = vector.multi_reduction <add>, %255, %cst_114 [1] : vector<8x32xf32> to vector<8xf32>
    %261 = vector.shape_cast %260 : vector<8xf32> to vector<8x1xf32>
    %cst_115 = arith.constant 3.200000e+01 : f32
    %262 = vector.broadcast %cst_115 : f32 to vector<8x1xf32>
    %263 = arith.divf %261, %262 : vector<8x1xf32>
    %264 = vector.broadcast %263 : vector<8x1xf32> to vector<8x32xf32>
    %265 = arith.subf %255, %264 : vector<8x32xf32>
    %266 = arith.mulf %265, %265 : vector<8x32xf32>
    %cst_116 = arith.constant dense<0.000000e+00> : vector<8xf32>
    %267 = vector.multi_reduction <add>, %266, %cst_116 [1] : vector<8x32xf32> to vector<8xf32>
    %268 = vector.shape_cast %267 : vector<8xf32> to vector<8x1xf32>
    %cst_117 = arith.constant 3.200000e+01 : f32
    %269 = vector.broadcast %cst_117 : f32 to vector<8x1xf32>
    %270 = arith.divf %268, %269 : vector<8x1xf32>
    %271 = vector.broadcast %263 : vector<8x1xf32> to vector<8x32xf32>
    %272 = arith.subf %255, %271 : vector<8x32xf32>
    %cst_118 = arith.constant 9.99999974E-6 : f32
    %273 = vector.broadcast %cst_118 : f32 to vector<8x1xf32>
    %274 = arith.addf %270, %273 : vector<8x1xf32>
    %275 = math.rsqrt %274 : vector<8x1xf32>
    %276 = vector.broadcast %275 : vector<8x1xf32> to vector<8x32xf32>
    %277 = arith.mulf %272, %276 : vector<8x32xf32>
    %278 = vector.broadcast %257 : vector<1x32xf32> to vector<8x32xf32>
    %279 = arith.mulf %277, %278 : vector<8x32xf32>
    %280 = vector.broadcast %259 : vector<1x32xf32> to vector<8x32xf32>
    %281 = arith.addf %279, %280 : vector<8x32xf32>
    %c0_119 = arith.constant 0 : index
    %c0_120 = arith.constant 0 : index
    %282 = vector.load %arg16[%c0_119, %c0_120] : memref<32x32xf32, #tpu.memory_space<vmem>>, vector<32x32xf32>
    %cst_121 = arith.constant dense<0.000000e+00> : vector<8x32xf32>
    %283 = tpu.matmul %281, %282, %cst_121 {dimension_numbers = #tpu.dot_dimension_numbers<[1], [0], [0], [1], [0, 0, 1, 1], [], []>} : vector<8x32xf32>, vector<32x32xf32>, vector<8x32xf32> -> vector<8x32xf32>
    %c0_122 = arith.constant 0 : index
    %c0_123 = arith.constant 0 : index
    %284 = vector.load %arg17[%c0_122, %c0_123] : memref<1x32xf32, #tpu.memory_space<vmem>>, vector<1x32xf32>
    %285 = vector.broadcast %284 : vector<1x32xf32> to vector<8x32xf32>
    %286 = arith.addf %283, %285 : vector<8x32xf32>
    %c0_124 = arith.constant 0 : index
    %c0_125 = arith.constant 0 : index
    %287 = vector.load %arg18[%c0_124, %c0_125] : memref<32x128xf32, #tpu.memory_space<vmem>>, vector<32x128xf32>
    %cst_126 = arith.constant dense<0.000000e+00> : vector<8x128xf32>
    %288 = tpu.matmul %286, %287, %cst_126 {dimension_numbers = #tpu.dot_dimension_numbers<[1], [0], [0], [1], [0, 0, 1, 1], [], []>} : vector<8x32xf32>, vector<32x128xf32>, vector<8x128xf32> -> vector<8x128xf32>
    %c0_127 = arith.constant 0 : index
    %c0_128 = arith.constant 0 : index
    %289 = vector.load %arg19[%c0_127, %c0_128] : memref<1x128xf32, #tpu.memory_space<vmem>>, vector<1x128xf32>
    %290 = vector.broadcast %289 : vector<1x128xf32> to vector<8x128xf32>
    %291 = arith.addf %288, %290 : vector<8x128xf32>
    %c0_129 = arith.constant 0 : index
    %c0_130 = arith.constant 0 : index
    %292 = vector.load %arg20[%c0_129, %c0_130] : memref<8x128xf32, #tpu.memory_space<vmem>>, vector<8x128xf32>
    tpu.vector_store %arg20[%c0_129, %c0_130], %291 {strides = array<i32>} : memref<8x128xf32, #tpu.memory_space<vmem>>, vector<8x128xf32>,
    return
  }
}

</mosaic_0001>

<bundles_post_ra>
// kernel: tpu_custom_call.1
= control target key start
LH: loop header
LB: loop body
LE: loop exit
PB: predicated region body
PF: predicated region fallthrough
CT: control target
= control target key end

     0   :  { %s4236_s0 = inlined_call_operand.hbm [shape: f32[8,8], index: 0, kind: input, shape index: {}]   ;;  %s4237_s1 = inlined_call_operand.hbm [shape: f32[8,32], index: 1, kind: input, shape index: {}]   ;;  %s4238_s2 = inlined_call_operand.hbm [shape: f32[8,32], index: 2, kind: input, shape index: {}]   ;;  %s4239_s3 = inlined_call_operand.hbm [shape: f32[1,32], index: 3, kind: input, shape index: {}]   ;;  %s4240_s4 = inlined_call_operand.vmem [shape: f32[2,32,96], index: 4, kind: input, shape index: {}]   ;;  %s4241_s5 = inlined_call_operand.hbm [shape: f32[2,1,96], index: 5, kind: input, shape index: {}]   ;;  %s4242_s6 = inlined_call_operand.vmem [shape: f32[2,32,32], index: 6, kind: input, shape index: {}]   ;;  %s4243_s7 = inlined_call_operand.hbm [shape: f32[2,1,32], index: 7, kind: input, shape index: {}]   ;;  %s4244_s8 = inlined_call_operand.hbm [shape: f32[2,1,32], index: 8, kind: input, shape index: {}]   ;;  %s4245_s9 = inlined_call_operand.hbm [shape: f32[2,1,32], index: 9, kind: input, shape index: {}]   ;;  %s4246_s10 = inlined_call_operand.vmem [shape: f32[2,32,64], index: 10, kind: input, shape index: {}]   ;;  %s4247_s11 = inlined_call_operand.hbm [shape: f32[2,1,64], index: 11, kind: input, shape index: {}]   ;;  %s4248_s12 = inlined_call_operand.vmem [shape: f32[2,64,32], index: 12, kind: input, shape index: {}]   ;;  %s4249_s13 = inlined_call_operand.hbm [shape: f32[2,1,32], index: 13, kind: input, shape index: {}]   ;;  %s4250_s14 = inlined_call_operand.hbm [shape: f32[2,1,32], index: 14, kind: input, shape index: {}]   ;;  %s4251_s15 = inlined_call_operand.hbm [shape: f32[2,1,32], index: 15, kind: input, shape index: {}]   ;;  %s4252_s16 = inlined_call_operand.vmem [shape: f32[32,32], index: 16, kind: input, shape index: {}]   ;;  %s4253_s17 = inlined_call_operand.hbm [shape: f32[1,32], index: 17, kind: input, shape index: {}]   ;;  %s4254_s18 = inlined_call_operand.vmem [shape: f32[32,128], index: 18, kind: input, shape index: {}]   ;;  %s4255_s19 = inlined_call_operand.vmem [shape: f32[1,128], index: 19, kind: input, shape index: {}]   ;;  %s4256_s20 = inlined_call_operand.hbm [shape: f32[8,128], index: 20, kind: output, shape index: {}]  }
   0x1   :  { %4262 = sst [smem:[#allocation32_spill]] %s4236_s0 }
   0x2   :  { %4263 = sst [smem:[#allocation33_spill]] %s4237_s1 }
   0x3   :  { %4264 = sst [smem:[#allocation34_spill]] %s4238_s2 }
   0x4   :  { %4265 = sst [smem:[#allocation35_spill]] %s4239_s3 }
   0x5   :  { %4266 = sst [smem:[#allocation36_spill]] %s4240_s4 }
   0x6   :  { %25 = vsyncpa [#allocation3], 0 }
   0x7   :  { %26 = vsyncpa [#allocation6], 0 }
   0x8   :  { %27 = vsyncpa [#allocation9], 0 }
   0x9   :  { %28 = vsyncpa [#allocation12], 0 }
   0xa   :  { %29 = vsyncpa [#allocation15], 0 }
   0xb   :  { %30 = vsyncpa [#allocation18], 0 }
   0xc   :  { %31 = vsyncpa [#allocation21], 0 }
   0xd   :  { %32 = vsyncpa [#allocation4], 0  ;;  %s3522_s1 = smov [#allocation5]   ;;  %s3523_s23 = smov [#allocation8]  }
   0xe   :  { %s49_s22 = sshll.u32 %s3522_s1, 4  ;;  %s69_s24 = sshll.u32 %s3523_s23, 4  ;;  %s50_s22 = int_to_ptr.vmem [resolvable:$true] %s49_s22  ;;  %s70_s24 = int_to_ptr.vmem [resolvable:$true] %s69_s24 }
   0xf   :  { %s4267_s3 = sld [smem:[#allocation33_spill]] }
  0x15   :  { %s3198_s26 = scalar_lea.hbm %s4267_s3, 128 }
  0x16   :  { %p3199_p0 = scmp.ne.s32.totalorder %s4267_s3, %s3198_s26  ;;  %p3202_p1 = scmp.lt.u32.totalorder %s3198_s26, %s4267_s3 }
  0x18   :  { %p3204_p2 = pnand %p3202_p1, %p3199_p0 }
  0x1a   :  { %3207 = shalt.err (!%p3204_p2)
}
  0x1b   :  { %s3208_s30 = scalar_lea.vmem %s50_s22, 128  ;;  %p3213_p4 = scmp.lt.s32.totalorder %s50_s22, %s50_s22 }
  0x1c   :  { %p3209_p3 = scmp.ne.s32.totalorder %s50_s22, %s3208_s30  ;;  %p3214_p5 = scmp.lt.s32.totalorder %s3208_s30, %s3208_s30 }
  0x1e   :  { %p3215_p6 = por %p3214_p5, %p3213_p4 }
  0x20   :  { %p3216_p7 = pnand %p3215_p6, %p3209_p3 }
  0x22   :  { %3219 = shalt.err (!%p3216_p7)
}
  0x23   :  { %52 = dma.hbm_to_vmem [thread:$0]  %s4267_s3, 128, %s50_s22, [#allocation6]  }
  0x24   :  { %s4268_s2 = sld [smem:[#allocation35_spill]] }
  0x2a   :  { %s3220_s25 = scalar_lea.hbm %s4268_s2, 16 }
  0x2b   :  { %p3221_p8 = scmp.ne.s32.totalorder %s4268_s2, %s3220_s25  ;;  %p3224_p9 = scmp.lt.u32.totalorder %s3220_s25, %s4268_s2 }
  0x2d   :  { %p3226_p10 = pnand %p3224_p9, %p3221_p8 }
  0x2f   :  { %3229 = shalt.err (!%p3226_p10)
}
  0x30   :  { %s3230_s29 = scalar_lea.vmem %s70_s24, 16  ;;  %s3234_s30 = scalar_lea.vmem %s70_s24, 32 }
  0x31   :  { %p3231_p11 = scmp.ne.s32.totalorder %s70_s24, %s3230_s29  ;;  %p3235_p12 = scmp.lt.s32.totalorder %s70_s24, %s70_s24 }
  0x32   :  { %p3236_p13 = scmp.lt.s32.totalorder %s3234_s30, %s3230_s29 }
  0x34   :  { %p3237_p0 = por %p3236_p13, %p3235_p12 }
  0x36   :  { %p3238_p1 = pnand %p3237_p0, %p3231_p11 }
  0x38   :  { %3241 = shalt.err (!%p3238_p1)
}
  0x39   :  { %72 = dma.hbm_to_vmem [thread:$0]  %s4268_s2, 16, %s70_s24, [#allocation9]  }
  0x3a   :  { %s3524_s0 = smov [#allocation11]   ;;  %s3525_s1 = smov [#allocation14]  }
  0x3b   :  { %s94_s21 = sshll.u32 %s3524_s0, 4  ;;  %s118_s23 = sshll.u32 %s3525_s1, 4  ;;  %s95_s21 = int_to_ptr.vmem [resolvable:$true] %s94_s21  ;;  %s3677_s23 = int_to_ptr.vmem [resolvable:$true] %s118_s23 }
  0x3c   :  { %s3242_s28 = scalar_lea.hbm %s4243_s7, 32 }
  0x3d   :  { %p3243_p2 = scmp.ne.s32.totalorder %s4243_s7, %s3242_s28  ;;  %p3246_p3 = scmp.lt.u32.totalorder %s3242_s28, %s4243_s7 }
  0x3f   :  { %p3248_p4 = pnand %p3246_p3, %p3243_p2 }
  0x41   :  { %3251 = shalt.err (!%p3248_p4)
}
  0x42   :  { %s3252_s24 = scalar_lea.vmem %s95_s21, 32  ;;  %p3257_p6 = scmp.lt.s32.totalorder %s95_s21, %s95_s21 }
  0x43   :  { %p3253_p5 = scmp.ne.s32.totalorder %s95_s21, %s3252_s24  ;;  %p3258_p7 = scmp.lt.s32.totalorder %s3252_s24, %s3252_s24 }
  0x45   :  { %p3259_p8 = por %p3258_p7, %p3257_p6 }
  0x47   :  { %p3260_p9 = pnand %p3259_p8, %p3253_p5 }
  0x49   :  { %3263 = shalt.err (!%p3260_p9)
}
  0x4a   :  { %s3526_s2 = smov 16   ;;  %s3527_s22 = smov 1  }
  0x4b   :  { %100 = dma.hbm_to_vmem [thread:$0]  %s4243_s7, 32, %s95_s21, [#allocation12], %s3526_s2, %s3526_s2, %s3527_s22  }
  0x4c   :  { %s3264_s27 = scalar_lea.hbm %s4245_s9, 32 }
  0x4d   :  { %p3265_p10 = scmp.ne.s32.totalorder %s4245_s9, %s3264_s27  ;;  %p3268_p11 = scmp.lt.u32.totalorder %s3264_s27, %s4245_s9 }
  0x4f   :  { %p3270_p12 = pnand %p3268_p11, %p3265_p10 }
  0x51   :  { %3273 = shalt.err (!%p3270_p12)
}
  0x52   :  { %s3274_s30 = scalar_lea.vmem %s3677_s23, 32  ;;  %p3279_p0 = scmp.lt.s32.totalorder %s3677_s23, %s3677_s23 }
  0x53   :  { %p3275_p13 = scmp.ne.s32.totalorder %s3677_s23, %s3274_s30  ;;  %p3280_p1 = scmp.lt.s32.totalorder %s3274_s30, %s3274_s30 }
  0x55   :  { %p3281_p2 = por %p3280_p1, %p3279_p0 }
  0x57   :  { %p3282_p3 = pnand %p3281_p2, %p3275_p13 }
  0x59   :  { %3285 = shalt.err (!%p3282_p3)
}
  0x5a   :  { %124 = dma.hbm_to_vmem [thread:$0]  %s4245_s9, 32, %s3677_s23, [#allocation15], %s3526_s2, %s3526_s2, %s3527_s22  }
  0x5b   :  { %s3528_s24 = smov [#allocation17]   ;;  %s3529_s0 = smov [#allocation20]  }
  0x5c   :  { %s146_s3 = sshll.u32 %s3528_s24, 4  ;;  %s170_s1 = sshll.u32 %s3529_s0, 4  ;;  %s147_s3 = int_to_ptr.vmem [resolvable:$true] %s146_s3  ;;  %s3714_s1 = int_to_ptr.vmem [resolvable:$true] %s170_s1 }
  0x5d   :  { %s3286_s28 = scalar_lea.hbm %s4249_s13, 32 }
  0x5e   :  { %p3287_p4 = scmp.ne.s32.totalorder %s4249_s13, %s3286_s28  ;;  %p3290_p5 = scmp.lt.u32.totalorder %s3286_s28, %s4249_s13 }
  0x60   :  { %p3292_p6 = pnand %p3290_p5, %p3287_p4 }
  0x62   :  { %3295 = shalt.err (!%p3292_p6)
}
  0x63   :  { %s3296_s9 = scalar_lea.vmem %s147_s3, 32  ;;  %p3301_p8 = scmp.lt.s32.totalorder %s147_s3, %s147_s3 }
  0x64   :  { %p3297_p7 = scmp.ne.s32.totalorder %s147_s3, %s3296_s9  ;;  %p3302_p9 = scmp.lt.s32.totalorder %s3296_s9, %s3296_s9 }
  0x66   :  { %p3303_p10 = por %p3302_p9, %p3301_p8 }
  0x68   :  { %p3304_p11 = pnand %p3303_p10, %p3297_p7 }
  0x6a   :  { %3307 = shalt.err (!%p3304_p11)
}
  0x6b   :  { %152 = dma.hbm_to_vmem [thread:$0]  %s4249_s13, 32, %s147_s3, [#allocation18], %s3526_s2, %s3526_s2, %s3527_s22  }
  0x6c   :  { %s3308_s0 = scalar_lea.hbm %s4251_s15, 32 }
  0x6d   :  { %p3309_p12 = scmp.ne.s32.totalorder %s4251_s15, %s3308_s0  ;;  %p3312_p13 = scmp.lt.u32.totalorder %s3308_s0, %s4251_s15 }
  0x6f   :  { %p3314_p0 = pnand %p3312_p13, %p3309_p12 }
  0x71   :  { %3317 = shalt.err (!%p3314_p0)
}
  0x72   :  { %s3318_s4 = scalar_lea.vmem %s3714_s1, 32  ;;  %p3323_p2 = scmp.lt.s32.totalorder %s3714_s1, %s3714_s1 }
  0x73   :  { %p3319_p1 = scmp.ne.s32.totalorder %s3714_s1, %s3318_s4  ;;  %p3324_p3 = scmp.lt.s32.totalorder %s3318_s4, %s3318_s4 }
  0x75   :  { %p3325_p4 = por %p3324_p3, %p3323_p2 }
  0x77   :  { %p3326_p5 = pnand %p3325_p4, %p3319_p1 }
  0x79   :  { %3329 = shalt.err (!%p3326_p5)
}
  0x7a   :  { %176 = dma.hbm_to_vmem [thread:$0]  %s4251_s15, 32, %s3714_s1, [#allocation21], %s3526_s2, %s3526_s2, %s3527_s22  }
  0x7b   :  { %s3530_s29 = smov [#allocation2]   ;;  %s3531_s9 = smov [#allocation7]  }
  0x7c   :  { %s39_s30 = sshll.u32 %s3530_s29, 4  ;;  %s59_s23 = sshll.u32 %s3531_s9, 4  ;;  %s40_s30 = int_to_ptr.vmem [resolvable:$true] %s39_s30  ;;  %s60_s23 = int_to_ptr.vmem [resolvable:$true] %s59_s23 }
  0x7d   :  { %s4269_s24 = sld [smem:[#allocation32_spill]] }
  0x83   :  { %s3330_s0 = scalar_lea.hbm %s4269_s24, 128 }
  0x84   :  { %p3331_p6 = scmp.ne.s32.totalorder %s4269_s24, %s3330_s0  ;;  %p3334_p7 = scmp.lt.u32.totalorder %s3330_s0, %s4269_s24 }
  0x86   :  { %p3336_p8 = pnand %p3334_p7, %p3331_p6 }
  0x88   :  { %3339 = shalt.err (!%p3336_p8)
}
  0x89   :  { %s3340_s15 = scalar_lea.vmem %s40_s30, 128  ;;  %p3345_p10 = scmp.lt.s32.totalorder %s40_s30, %s40_s30 }
  0x8a   :  { %p3341_p9 = scmp.ne.s32.totalorder %s40_s30, %s3340_s15  ;;  %p3346_p11 = scmp.lt.s32.totalorder %s3340_s15, %s3340_s15 }
  0x8c   :  { %p3347_p12 = por %p3346_p11, %p3345_p10 }
  0x8e   :  { %p3348_p13 = pnand %p3347_p12, %p3341_p9 }
  0x90   :  { %3351 = shalt.err (!%p3348_p13)
}
  0x91   :  { %42 = dma.hbm_to_vmem [thread:$0]  %s4269_s24, 128, %s40_s30, [#allocation3]  }
  0x92   :  { %s4270_s29 = sld [smem:[#allocation34_spill]] }
  0x98   :  { %s3352_s9 = scalar_lea.hbm %s4270_s29, 128 }
  0x99   :  { %p3353_p0 = scmp.ne.s32.totalorder %s4270_s29, %s3352_s9  ;;  %p3356_p1 = scmp.lt.u32.totalorder %s3352_s9, %s4270_s29 }
  0x9b   :  { %p3358_p2 = pnand %p3356_p1, %p3353_p0 }
  0x9d   :  { %3361 = shalt.err (!%p3358_p2)
}
  0x9e   :  { %s3362_s27 = scalar_lea.vmem %s60_s23, 128  ;;  %p3367_p4 = scmp.lt.s32.totalorder %s60_s23, %s60_s23 }
  0x9f   :  { %p3363_p3 = scmp.ne.s32.totalorder %s60_s23, %s3362_s27  ;;  %p3368_p5 = scmp.lt.s32.totalorder %s3362_s27, %s3362_s27 }
  0xa1   :  { %p3369_p6 = por %p3368_p5, %p3367_p4 }
  0xa3   :  { %p3370_p7 = pnand %p3369_p6, %p3363_p3 }
  0xa5   :  { %3373 = shalt.err (!%p3370_p7)
}
  0xa6   :  { %62 = dma.hbm_to_vmem [thread:$0]  %s4270_s29, 128, %s60_s23, [#allocation6]  }
  0xa7   :  { %s3532_s28 = smov [#allocation10]   ;;  %s3533_s15 = smov [#allocation13]  }
  0xa8   :  { %s80_s26 = sshll.u32 %s3532_s28, 4  ;;  %s106_s1 = sshll.u32 %s3533_s15, 4  ;;  %s81_s26 = int_to_ptr.vmem [resolvable:$true] %s80_s26  ;;  %s3775_s1 = int_to_ptr.vmem [resolvable:$true] %s106_s1 }
  0xa9   :  { %s3374_s3 = scalar_lea.hbm %s4241_s5, 32 }
  0xaa   :  { %p3375_p8 = scmp.ne.s32.totalorder %s4241_s5, %s3374_s3  ;;  %p3378_p9 = scmp.lt.u32.totalorder %s3374_s3, %s4241_s5 }
  0xac   :  { %p3380_p10 = pnand %p3378_p9, %p3375_p8 }
  0xae   :  { %3383 = shalt.err (!%p3380_p10)
}
  0xaf   :  { %s3384_s23 = scalar_lea.vmem %s81_s26, 32  ;;  %p3389_p12 = scmp.lt.s32.totalorder %s81_s26, %s81_s26 }
  0xb0   :  { %p3385_p11 = scmp.ne.s32.totalorder %s81_s26, %s3384_s23  ;;  %p3390_p13 = scmp.lt.s32.totalorder %s3384_s23, %s3384_s23 }
  0xb2   :  { %p3391_p0 = por %p3390_p13, %p3389_p12 }
  0xb4   :  { %p3392_p1 = pnand %p3391_p0, %p3385_p11 }
  0xb6   :  { %3395 = shalt.err (!%p3392_p1)
}
  0xb7   :  { %86 = dma.hbm_to_vmem [thread:$0]  %s4241_s5, 32, %s81_s26, [#allocation9], %s3526_s2, %s3526_s2, %s3527_s22  }
  0xb8   :  { %s3396_s24 = scalar_lea.hbm %s4244_s8, 32 }
  0xb9   :  { %p3397_p2 = scmp.ne.s32.totalorder %s4244_s8, %s3396_s24  ;;  %p3400_p3 = scmp.lt.u32.totalorder %s3396_s24, %s4244_s8 }
  0xbb   :  { %p3402_p4 = pnand %p3400_p3, %p3397_p2 }
  0xbd   :  { %3405 = shalt.err (!%p3402_p4)
}
  0xbe   :  { %s3406_s3 = scalar_lea.vmem %s3775_s1, 32  ;;  %p3411_p6 = scmp.lt.s32.totalorder %s3775_s1, %s3775_s1 }
  0xbf   :  { %p3407_p5 = scmp.ne.s32.totalorder %s3775_s1, %s3406_s3  ;;  %p3412_p7 = scmp.lt.s32.totalorder %s3406_s3, %s3406_s3 }
  0xc1   :  { %p3413_p8 = por %p3412_p7, %p3411_p6 }
  0xc3   :  { %p3414_p9 = pnand %p3413_p8, %p3407_p5 }
  0xc5   :  { %3417 = shalt.err (!%p3414_p9)
}
  0xc6   :  { %112 = dma.hbm_to_vmem [thread:$0]  %s4244_s8, 32, %s3775_s1, [#allocation12], %s3526_s2, %s3526_s2, %s3527_s22  }
  0xc7   :  { %s3534_s9 = smov [#allocation16]   ;;  %s3535_s21 = smov [#allocation19]  }
  0xc8   :  { %s132_s7 = sshll.u32 %s3534_s9, 4  ;;  %s158_s0 = sshll.u32 %s3535_s21, 4  ;;  %s133_s7 = int_to_ptr.vmem [resolvable:$true] %s132_s7  ;;  %s3812_s0 = int_to_ptr.vmem [resolvable:$true] %s158_s0 }
  0xc9   :  { %s3418_s25 = scalar_lea.hbm %s4247_s11, 32 }
  0xca   :  { %p3419_p10 = scmp.ne.s32.totalorder %s4247_s11, %s3418_s25  ;;  %p3422_p11 = scmp.lt.u32.totalorder %s3418_s25, %s4247_s11 }
  0xcc   :  { %p3424_p12 = pnand %p3422_p11, %p3419_p10 }
  0xce   :  { %3427 = shalt.err (!%p3424_p12)
}
  0xcf   :  { %s3428_s8 = scalar_lea.vmem %s133_s7, 32  ;;  %p3433_p0 = scmp.lt.s32.totalorder %s133_s7, %s133_s7 }
  0xd0   :  { %p3429_p13 = scmp.ne.s32.totalorder %s133_s7, %s3428_s8  ;;  %p3434_p1 = scmp.lt.s32.totalorder %s3428_s8, %s3428_s8 }
  0xd2   :  { %p3435_p2 = por %p3434_p1, %p3433_p0 }
  0xd4   :  { %p3436_p3 = pnand %p3435_p2, %p3429_p13 }
  0xd6   :  { %3439 = shalt.err (!%p3436_p3)
}
  0xd7   :  { %138 = dma.hbm_to_vmem [thread:$0]  %s4247_s11, 32, %s133_s7, [#allocation15], %s3526_s2, %s3526_s2, %s3527_s22  }
  0xd8   :  { %s3440_s3 = scalar_lea.hbm %s4250_s14, 32 }
  0xd9   :  { %p3441_p4 = scmp.ne.s32.totalorder %s4250_s14, %s3440_s3  ;;  %p3444_p5 = scmp.lt.u32.totalorder %s3440_s3, %s4250_s14 }
  0xdb   :  { %p3446_p6 = pnand %p3444_p5, %p3441_p4 }
  0xdd   :  { %3449 = shalt.err (!%p3446_p6)
}
  0xde   :  { %s3450_s23 = scalar_lea.vmem %s3812_s0, 32  ;;  %p3455_p8 = scmp.lt.s32.totalorder %s3812_s0, %s3812_s0 }
  0xdf   :  { %p3451_p7 = scmp.ne.s32.totalorder %s3812_s0, %s3450_s23  ;;  %p3456_p9 = scmp.lt.s32.totalorder %s3450_s23, %s3450_s23 }
  0xe1   :  { %p3457_p10 = por %p3456_p9, %p3455_p8 }
  0xe3   :  { %p3458_p11 = pnand %p3457_p10, %p3451_p7 }
  0xe5   :  { %3461 = shalt.err (!%p3458_p11)
}
  0xe6   :  { %164 = dma.hbm_to_vmem [thread:$0]  %s4250_s14, 32, %s3812_s0, [#allocation18], %s3526_s2, %s3526_s2, %s3527_s22  }
  0xe7   :  { %s3536_s29 = smov [#allocation22]   ;;  %s3462_s24 = scalar_lea.hbm %s4253_s17, 16 }
  0xe8   :  { %s185_s25 = sshll.u32 %s3536_s29, 4  ;;  %p3463_p12 = scmp.ne.s32.totalorder %s4253_s17, %s3462_s24  ;;  %s186_s25 = int_to_ptr.vmem [resolvable:$true] %s185_s25 }
  0xe9   :  { %p3466_p13 = scmp.lt.u32.totalorder %s3462_s24, %s4253_s17 }
  0xeb   :  { %p3468_p0 = pnand %p3466_p13, %p3463_p12 }
  0xed   :  { %3471 = shalt.err (!%p3468_p0)
}
  0xee   :  { %s3472_s4 = scalar_lea.vmem %s186_s25, 16  ;;  %s3476_s14 = scalar_lea.vmem %s186_s25, 32 }
  0xef   :  { %p3473_p1 = scmp.ne.s32.totalorder %s186_s25, %s3472_s4  ;;  %p3477_p2 = scmp.lt.s32.totalorder %s186_s25, %s186_s25 }
  0xf0   :  { %p3478_p3 = scmp.lt.s32.totalorder %s3476_s14, %s3472_s4 }
  0xf2   :  { %p3479_p4 = por %p3478_p3, %p3477_p2 }
  0xf4   :  { %p3480_p5 = pnand %p3479_p4, %p3473_p1 }
  0xf6   :  { %3483 = shalt.err (!%p3480_p5)
}
  0xf7   :  { %188 = dma.hbm_to_vmem [thread:$0]  %s4253_s17, 16, %s186_s25, [#allocation21]  }
  0xf8   :  { %3506 = dma.done.wait [#allocation3], 128  }
  0xf9   :  { %3507 = vsyncadd [#allocation3], 4294967168 }
  0xfa   :  { %3508 = dma.done.wait [#allocation6], 256  }
  0xfb   :  { %3509 = vsyncadd [#allocation6], 4294967040 }
  0xfc   :  { %3510 = dma.done.wait [#allocation9], 48  }
  0xfd   :  { %3511 = vsyncadd [#allocation9], 4294967248 }
  0xfe   :  { %3512 = dma.done.wait [#allocation12], 64  }
  0xff   :  { %3513 = vsyncadd [#allocation12], 4294967232 }
 0x100   :  { %3514 = dma.done.wait [#allocation15], 64  }
 0x101   :  { %3515 = vsyncadd [#allocation15], 4294967232 }
 0x102   :  { %3516 = dma.done.wait [#allocation18], 64  }
 0x103   :  { %3517 = vsyncadd [#allocation18], 4294967232 }
 0x104   :  { %3518 = dma.done.wait [#allocation21], 48  }
 0x105   :  { %3519 = vsyncadd [#allocation21], 4294967248  ;;  %v3537_v0 = vmov 0.0   ;;  %vm3538_vm0 = vmmov 0   ;;  %v3539_v1 = vmov 0.0|0.0   ;;  %vm241_vm1 = vcmask 64512  }
 0x106   :  { %2849 = vmatprep.subr.mxu0 %v3537_v0  ;;  %2851 = vmatprep.mubr.msk.f32.mxu0 %vm3538_vm0, %v3537_v0  ;;  %v233_v2 = vld [vmem:[#allocation7] sm:$0xff]  ;;  %v232_v3 = vld [vmem:[#allocation2] sm:$0xff]  ;;  %s4271_s3 = sld [smem:[#allocation36_spill]]  ;;  %v2683_v10 = vld [vmem:[#allocation8] ss:$0 sm:$0xff]  ;;  %vm329_vm2 = vcmask 261120  }
 0x107   :  { %3060 = vmatprep.subr.bf16.mxu1 %v3539_v1  ;;  %2862 = vmatprep.mubr.msk.f32.mxu1 %vm3538_vm0, %v3537_v0  ;;  %v316_v14 = vld [vmem:[#allocation5] sm:$0xff]  ;;  %v2685_v17 = vld [vmem:[#allocation10] ss:$0 sm:$0xff]  ;;  %s3540_s7 = smov 104   ;;  %s3541_s29 = smov 120   ;;  %vm1079_vm3 = vcmask 130048  }
 0x108   :  { %2850 = vmatpush3.msra.mxu0 %v233_v2  ;;  %s3542_s25 = smov 96   ;;  %s3543_s27 = smov 112   ;;  %vm1081_vm4 = vcmask 195584   ;;  %vm1298_vm5 = vcmask 523264  }
 0x109   :  { %2852 = vmatmul.mubr.msk.f32.vlgmr.msra.gmra.mrb[0].mxu0 %vm241_vm1, %v232_v3  ;;  %2865 = vmatprep.subr.mxu0 %v3537_v0  ;;  %s3544_s30 = smov 64   ;;  %s3545_s0 = smov 8  }
 0x10a   :  { %2867 = vmatprep.mubr.msk.f32.mxu0 %vm3538_vm0, %v3537_v0  ;;  %s3546_s17 = smov 24   ;;  %s3547_s22 = smov [#allocation23]  }
 0x10b   :  { %s2668_s13 = sshll.u32 %s3547_s22, 4  ;;  %s2669_s13 = int_to_ptr.vmem [resolvable:$true] %s2668_s13 }
 0x10c   :  { %v318_v4 = vld [vmem:[%s4271_s3] sm:$0xff]  ;;  %v319_v5 = vld [vmem:[%s4271_s3 + $0x8] sm:$0xff]  ;;  %v320_v7 = vld [vmem:[%s4271_s3 + $0x10] sm:$0xff]  ;;  %p3489_p7 = scmp.lt.s32.totalorder %s2669_s13, %s2669_s13 }
 0x10d   :  { %v3061_v6 = vpack.c.bf16 %v319_v5, %v318_v4  ;;  %v321_v8 = vld [vmem:[%s4271_s3 + $0x18] sm:$0xff] }
 0x10e   :  { %v3064_v9 = vpack.c.bf16 %v321_v8, %v320_v7 }
 0x10f   :  { %3062 = vmatpush3.bf16.msra.mxu1 %v3061_v6 }
 0x110   :  { %3063 = vmatprep.subr.bf16.mxu1 %v3539_v1 }
 0x113   :  { %3065 = vmatpush3.bf16.msra.mxu1 %v3064_v9 }
 0x114   :  { %2875 = vmatprep.subr.mxu1 %v3537_v0 }
 0x1dc   :  { %v311_v11 = vpop.f32.mrb[0].mxu0 }
 0x1dd   :  { %v312_v12 = vadd.f32 %v2683_v10, %v311_v11  ;;  %v2853_v13 = vpop.f32.mrb[1].mxu0 }
 0x1df   :  { %v315_v15 = vmul.f32 5.656854, %v312_v12 }
 0x1e1   :  { %v3885_v16 = vadd.f32 %v316_v14, %v315_v15 }
 0x1e3   :  { %2863 = vmatmul.mubr.msk.f32.vlgmr.msra.gmra.mrb[0].mxu1 %vm329_vm2, %v3885_v16 }
 0x1e4   :  { %2877 = vmatprep.mubr.msk.f32.mxu1 %vm3538_vm0, %v3537_v0 }
 0x2b6   :  { %v399_v18 = vpop.f32.mrb[0].mxu1 }
 0x2b7   :  { %v400_v19 = vadd.f32 %v2685_v17, %v399_v18  ;;  %v2864_v20 = vpop.f32.mrb[1].mxu1 }
 0x2b8   :  { %v1084_v20 = vld [vmem:[%s4242_s6 + $0x8] sm:$0xff] }
 0x2b9   :  { %408 = vrot.lane.b32.xlu1 %v400_v19, %s3540_s7  ;;  %404 = vrot.lane.b32.xlu0 %v400_v19, %s3541_s29 }
 0x2bd   :  { %410 = vrot.lane.b32.xlu1 %v400_v19, %s3542_s25  ;;  %406 = vrot.lane.b32.xlu0 %v400_v19, %s3543_s27 }
 0x32b   :  { %v3895_v21 = vpop.permute.xlu1 %408  ;;  %v405_v22 = vpop.permute.xlu0 %404 }
 0x32c   :  { %486 = vrot.lane.b32.xlu0 %v405_v22, %s3542_s25 }
 0x32f   :  { %v411_v23 = vpop.permute.xlu1 %410  ;;  %v3898_v24 = vpop.permute.xlu0 %406 }
 0x330   :  { %2866 = vmatpush3.xpose.msk.msra.mxu0 %vm241_vm1, %v411_v23  ;;  %638 = vrot.lane.b32.xlu0 %v3895_v21, %s3542_s25 }
 0x331   :  { %562 = vrot.lane.b32.xlu1 %v3898_v24, %s3542_s25  ;;  %2870 = vmatprep.subr.mxu0 %v3537_v0 }
 0x333   :  { %2868 = vmatmul.mubr.msk.f32.vlgmr.msra.gmra.mrb[2].mxu0 %vm241_vm1, %v400_v19 }
 0x334   :  { %2872 = vmatprep.mubr.msk.f32.mxu0 %vm3538_vm0, %v3537_v0 }
 0x39e   :  { %v487_v25 = vpop.permute.xlu0 %486 }
 0x39f   :  { %2871 = vmatpush3.xpose.msk.msra.mxu0 %vm241_vm1, %v487_v25  ;;  %v1086_v25 = vld [vmem:[%s4242_s6 + $0x18] sm:$0xff] }
 0x3a0   :  { %2880 = vmatprep.subr.mxu0 %v3537_v0 }
 0x3a2   :  { %2873 = vmatmul.mubr.msk.f32.vlgmr.msra.gmra.mrb[4].mxu0 %vm241_vm1, %v405_v22  ;;  %v639_v26 = vpop.permute.xlu0 %638 }
 0x3a3   :  { %v563_v27 = vpop.permute.xlu1 %562  ;;  %2881 = vmatpush3.xpose.msk.msra.mxu0 %vm241_vm1, %v639_v26  ;;  %2882 = vmatprep.mubr.msk.f32.mxu0 %vm3538_vm0, %v3537_v0 }
 0x3a4   :  { %2876 = vmatpush3.xpose.msk.msra.mxu1 %vm241_vm1, %v563_v27  ;;  %2890 = vmatprep.subr.mxu0 %v3537_v0 }
 0x3a5   :  { %2885 = vmatprep.subr.mxu1 %v3537_v0 }
 0x3a6   :  { %2883 = vmatmul.mubr.msk.f32.vlgmr.msra.gmra.mrb[6].mxu0 %vm241_vm1, %v3895_v21 }
 0x3a7   :  { %2878 = vmatmul.mubr.msk.f32.vlgmr.msra.gmra.mrb[2].mxu1 %vm241_vm1, %v3898_v24  ;;  %2892 = vmatprep.mubr.msk.f32.mxu0 %vm3538_vm0, %v3537_v0 }
 0x3a8   :  { %2887 = vmatprep.mubr.msk.f32.mxu1 %vm3538_vm0, %v3537_v0 }
 0x406   :  { %v482_v28 = vpop.f32.mrb[2].mxu0 }
 0x407   :  { %v714_v29 = vmul.f32 0.35355338, %v482_v28  ;;  %v2869_v30 = vpop.f32.mrb[3].mxu0 }
 0x409   :  { %v718_v31 = vsel %vm241_vm1, %v714_v29, -inf }
 0x40a   :  { %719 = vmax.xlane.f32.xlu1 %v718_v31 }
 0x475   :  { %v558_v32 = vpop.f32.mrb[4].mxu0 }
 0x476   :  { %v715_v33 = vmul.f32 0.35355338, %v558_v32  ;;  %v2874_v34 = vpop.f32.mrb[5].mxu0 }
 0x478   :  { %v721_v35 = vsel %vm241_vm1, %v715_v33, -inf }
 0x479   :  { %722 = vmax.xlane.f32.xlu0 %v721_v35  ;;  %v710_v36 = vpop.f32.mrb[6].mxu0 }
 0x47a   :  { %v634_v37 = vpop.f32.mrb[2].mxu1  ;;  %v717_v38 = vmul.f32 0.35355338, %v710_v36  ;;  %v2884_v39 = vpop.f32.mrb[7].mxu0 }
 0x47b   :  { %v716_v40 = vmul.f32 0.35355338, %v634_v37  ;;  %v2879_v41 = vpop.f32.mrb[3].mxu1  ;;  %v2699_v39 = vld [vmem:[#allocation11] ss:$0 sm:$0xff] }
 0x47c   :  { %v727_v42 = vsel %vm241_vm1, %v717_v38, -inf }
 0x47d   :  { %v724_v43 = vsel %vm241_vm1, %v716_v40, -inf  ;;  %728 = vmax.xlane.f32.xlu1 %v727_v42 }
 0x47e   :  { %725 = vmax.xlane.f32.xlu0 %v724_v43 }
 0x48e   :  { %838 = vrot.lane.b32.xlu1 %v405_v22, %s3544_s30 }
 0x494   :  { %762 = vrot.lane.b32.xlu0 %v400_v19, %s3544_s30  ;;  %v1083_v19 = vld [vmem:[%s4242_s6] sm:$0xff] }
 0x497   :  { %v720_v44 = vpop.xlane.xlu1 %719 }
 0x498   :  { %v730_v45 = vsub.f32 %v714_v29, %v720_v44 }
 0x49a   :  { %v734_v46 = vmul.f32 1.442695, %v730_v45 }
 0x49c   :  { %3158 = vpow2.f32 %v734_v46 }
 0x4a6   :  { %v3159_v47 = vpop.eup %3158 }
 0x4a7   :  { %v742_v48 = vsel %vm241_vm1, %v3159_v47, 0.0 }
 0x4b3   :  { %743 = vadd.xlane.f32.xlu0 %v742_v48 }
 0x506   :  { %v723_v49 = vpop.xlane.xlu0 %722 }
 0x507   :  { %v731_v50 = vsub.f32 %v715_v33, %v723_v49 }
 0x509   :  { %v736_v51 = vmul.f32 1.442695, %v731_v50  ;;  %v1198_v50 = vld [vmem:[%s4246_s10] sm:$0xff] }
 0x50a   :  { %v729_v52 = vpop.xlane.xlu1 %728 }
 0x50b   :  { %3160 = vpow2.f32 %v736_v51  ;;  %v726_v53 = vpop.xlane.xlu0 %725  ;;  %v733_v54 = vsub.f32 %v717_v38, %v729_v52  ;;  %v1199_v51 = vld [vmem:[%s4246_s10 + $0x8] sm:$0xff] }
 0x50c   :  { %v732_v55 = vsub.f32 %v716_v40, %v726_v53  ;;  %v3073_v52 = vpack.c.bf16 %v1199_v51, %v1198_v50  ;;  %v1201_v53 = vld [vmem:[%s4246_s10 + $0x18] sm:$0xff] }
 0x50d   :  { %v740_v56 = vmul.f32 1.442695, %v733_v54 }
 0x50e   :  { %v738_v57 = vmul.f32 1.442695, %v732_v55  ;;  %v839_v58 = vpop.permute.xlu1 %838  ;;  %v1283_v55 = vld [vmem:[%s4248_s12] sm:$0xff] }
 0x50f   :  { %3162 = vpow2.f32 %v740_v56  ;;  %v763_v59 = vpop.permute.xlu0 %762  ;;  %2891 = vmatpush3.msra.mxu0 %v839_v58  ;;  %v1284_v56 = vld [vmem:[%s4248_s12 + $0x8] sm:$0xff] }
 0x510   :  { %3164 = vpow2.f32 %v738_v57  ;;  %2886 = vmatpush3.msra.mxu1 %v763_v59  ;;  %2900 = vmatprep.subr.mxu0 %v3537_v0  ;;  %v1285_v57 = vld [vmem:[%s4248_s12 + $0x10] sm:$0xff]  ;;  %v3079_v58 = vpack.c.bf16 %v1284_v56, %v1283_v55  ;;  %v1286_v59 = vld [vmem:[%s4248_s12 + $0x18] sm:$0xff] }
 0x511   :  { %2895 = vmatprep.subr.mxu1 %v3537_v0 }
 0x515   :  { %v3161_v60 = vpop.eup %3160 }
 0x516   :  { %v745_v61 = vsel %vm241_vm1, %v3161_v60, 0.0 }
 0x517   :  { %746 = vadd.xlane.f32.xlu1 %v745_v61  ;;  %v1287_v61 = vld [vmem:[%s4248_s12 + $0x20] sm:$0xff] }
 0x519   :  { %v3163_v62 = vpop.eup %3162 }
 0x51a   :  { %v3165_v63 = vpop.eup %3164  ;;  %v751_v2 = vsel %vm241_vm1, %v3163_v62, 0.0 }
 0x51b   :  { %v748_v3 = vsel %vm241_vm1, %v3165_v63, 0.0  ;;  %752 = vadd.xlane.f32.xlu1 %v751_v2 }
 0x51c   :  { %749 = vadd.xlane.f32.xlu0 %v748_v3 }
 0x52c   :  { %914 = vrot.lane.b32.xlu1 %v3898_v24, %s3544_s30  ;;  %v1085_v24 = vld [vmem:[%s4242_s6 + $0x10] sm:$0xff] }
 0x52d   :  { %v3070_v26 = vpack.c.bf16 %v1086_v25, %v1085_v24 }
 0x532   :  { %990 = vrot.lane.b32.xlu0 %v3895_v21, %s3544_s30  ;;  %v3067_v21 = vpack.c.bf16 %v1084_v20, %v1083_v19  ;;  %v2705_v20 = vld [vmem:[#allocation17] ss:$0 sm:$0xff] }
 0x540   :  { %v744_v4 = vpop.xlane.xlu0 %743 }
 0x541   :  { %3166 = vrcp.f32 %v744_v4 }
 0x54b   :  { %v3167_v5 = vpop.eup %3166 }
 0x54c   :  { %v755_v6 = vmul.f32 %v3167_v5, %v3159_v47 }
 0x54e   :  { %2888 = vmatmul.mubr.msk.f32.vlgmr.msra.gmra.mrb[4].mxu1 %vm241_vm1, %v755_v6  ;;  %v2701_v6 = vld [vmem:[#allocation13] ss:$0 sm:$0xff] }
 0x54f   :  { %2897 = vmatprep.mubr.msk.f32.mxu1 %vm3538_vm0, %v3537_v0 }
 0x5a4   :  { %v747_v7 = vpop.xlane.xlu1 %746 }
 0x5a5   :  { %3168 = vrcp.f32 %v747_v7 }
 0x5a8   :  { %v753_v8 = vpop.xlane.xlu1 %752 }
 0x5a9   :  { %v750_v9 = vpop.xlane.xlu0 %749  ;;  %3170 = vrcp.f32 %v753_v8  ;;  %v2702_v8 = vld [vmem:[#allocation14] ss:$0 sm:$0xff] }
 0x5aa   :  { %3172 = vrcp.f32 %v750_v9 }
 0x5ac   :  { %v915_v10 = vpop.permute.xlu1 %914 }
 0x5ad   :  { %2896 = vmatpush3.msra.mxu1 %v915_v10  ;;  %v991_v13 = vpop.permute.xlu0 %990 }
 0x5ae   :  { %3066 = vmatprep.subr.bf16.mxu1 %v3539_v1 }
 0x5af   :  { %v3169_v11 = vpop.eup %3168 }
 0x5b0   :  { %v757_v12 = vmul.f32 %v3169_v11, %v3161_v60  ;;  %v3082_v60 = vpack.c.bf16 %v1286_v59, %v1285_v57  ;;  %v1289_v11 = vld [vmem:[%s4248_s12 + $0x30] sm:$0xff] }
 0x5b2   :  { %2893 = vmatmul.mubr.msk.f32.vlgmr.msra.gmra.mrb[8].mxu0 %vm241_vm1, %v757_v12  ;;  %v1290_v12 = vld [vmem:[%s4248_s12 + $0x38] sm:$0xff] }
 0x5b3   :  { %v3171_v14 = vpop.eup %3170  ;;  %2901 = vmatpush3.msra.mxu0 %v991_v13  ;;  %2902 = vmatprep.mubr.msk.f32.mxu0 %vm3538_vm0, %v3537_v0  ;;  %v3088_v13 = vpack.c.bf16 %v1290_v12, %v1289_v11 }
 0x5b4   :  { %v3173_v15 = vpop.eup %3172  ;;  %v761_v17 = vmul.f32 %v3171_v14, %v3163_v62  ;;  %3072 = vmatprep.subr.bf16.mxu0 %v3539_v1  ;;  %v1288_v62 = vld [vmem:[%s4248_s12 + $0x28] sm:$0xff]  ;;  %v2703_v14 = vld [vmem:[#allocation16] ss:$0 sm:$0xff] }
 0x5b5   :  { %v759_v18 = vmul.f32 %v3173_v15, %v3165_v63  ;;  %v3085_v63 = vpack.c.bf16 %v1288_v62, %v1287_v61 }
 0x5b6   :  { %2903 = vmatmul.mubr.msk.f32.vlgmr.msra.gmra.mrb[10].mxu0 %vm241_vm1, %v761_v17 }
 0x5b7   :  { %2898 = vmatmul.mubr.msk.f32.vlgmr.msra.gmra.mrb[6].mxu1 %vm241_vm1, %v759_v18  ;;  %2924 = vmatprep.mubr.msk.f32.mxu0 %vm3538_vm0, %v3537_v0 }
 0x5b8   :  { %2913 = vmatprep.mubr.msk.f32.mxu1 %vm3538_vm0, %v3537_v0  ;;  %3068 = vmatpush3.bf16.msra.mxu1 %v3067_v21 }
 0x5b9   :  { %3069 = vmatprep.subr.bf16.mxu1 %v3539_v1  ;;  %3074 = vmatpush3.bf16.msra.mxu0 %v3073_v52 }
 0x5ba   :  { %3075 = vmatprep.subr.bf16.mxu0 %v3539_v1 }
 0x5bc   :  { %3071 = vmatpush3.bf16.msra.mxu1 %v3070_v26 }
 0x5bd   :  { %3078 = vmatprep.subr.bf16.mxu1 %v3539_v1 }
 0x621   :  { %v834_v22 = vpop.f32.mrb[4].mxu1 }
 0x622   :  { %v2889_v23 = vpop.f32.mrb[5].mxu1 }
 0x685   :  { %v910_v27 = vpop.f32.mrb[8].mxu0 }
 0x686   :  { %1067 = vrot.lane.b32.xlu1 %v910_v27, %s3545_s0  ;;  %v2894_v28 = vpop.f32.mrb[9].mxu0 }
 0x689   :  { %v1062_v29 = vpop.f32.mrb[10].mxu0 }
 0x68a   :  { %v986_v30 = vpop.f32.mrb[6].mxu1  ;;  %1075 = vrot.lane.b32.xlu1 %v1062_v29, %s3546_s17  ;;  %v2904_v31 = vpop.f32.mrb[11].mxu0 }
 0x68b   :  { %1071 = vrot.lane.b32.xlu0 %v986_v30, %s3526_s2  ;;  %v2899_v32 = vpop.f32.mrb[7].mxu1  ;;  %v2709_v31 = vld [vmem:[%s4271_s3 + $0x20] sm:$0xff] }
 0x68c   :  { %v2710_v32 = vld [vmem:[%s4271_s3 + $0x28] sm:$0xff] }
 0x6f8   :  { %v1068_v33 = vpop.permute.xlu1 %1067 }
 0x6f9   :  { %v1078_v35 = vsel %vm241_vm1, %v834_v22, %v1068_v33  ;;  %v3091_v33 = vpack.c.bf16 %v2710_v32, %v2709_v31 }
 0x6fc   :  { %v1076_v34 = vpop.permute.xlu1 %1075 }
 0x6fd   :  { %v1072_v36 = vpop.permute.xlu0 %1071 }
 0x6fe   :  { %v1080_v37 = vsel %vm1079_vm3, %v1078_v35, %v1072_v36  ;;  %v2712_v35 = vld [vmem:[%s4271_s3 + $0x38] sm:$0xff] }
 0x6ff   :  { %v1082_v38 = vsel %vm1081_vm4, %v1080_v37, %v1076_v34  ;;  %v2711_v34 = vld [vmem:[%s4271_s3 + $0x30] sm:$0xff] }
 0x700   :  { %2914 = vmatmul.mubr.msk.f32.vlgmr.msra.gmra.mrb[8].mxu1 %vm329_vm2, %v1082_v38  ;;  %v3094_v36 = vpack.c.bf16 %v2712_v35, %v2711_v34 }
 0x701   :  { %2943 = vmatprep.mubr.msk.f32.mxu1 %vm3538_vm0, %v3537_v0  ;;  %3080 = vmatpush3.bf16.msra.mxu1 %v3079_v58 }
 0x702   :  { %3081 = vmatprep.subr.bf16.mxu1 %v3539_v1 }
 0x705   :  { %3083 = vmatpush3.bf16.msra.mxu1 %v3082_v60 }
 0x706   :  { %3084 = vmatprep.subr.bf16.mxu1 %v3539_v1 }
 0x709   :  { %3086 = vmatpush3.bf16.msra.mxu1 %v3085_v63 }
 0x70a   :  { %3087 = vmatprep.subr.bf16.mxu1 %v3539_v1 }
 0x70d   :  { %3089 = vmatpush3.bf16.msra.mxu1 %v3088_v13 }
 0x70e   :  { %2967 = vmatprep.subr.mxu1 %v3537_v0 }
 0x7d3   :  { %v1163_v40 = vpop.f32.mrb[8].mxu1 }
 0x7d4   :  { %v1164_v41 = vadd.f32 %v2699_v39, %v1163_v40  ;;  %v2915_v42 = vpop.f32.mrb[9].mxu1 }
 0x7d6   :  { %v1167_v43 = vadd.f32 %v1164_v41, %v3885_v16  ;;  %v1200_v16 = vld [vmem:[%s4246_s10 + $0x10] sm:$0xff]  ;;  %v2707_v41 = vld [vmem:[#allocation19] ss:$0 sm:$0xff] }
 0x7d7   :  { %v3076_v54 = vpack.c.bf16 %v1201_v53, %v1200_v16 }
 0x7d8   :  { %v1170_v44 = vsel %vm329_vm2, %v1167_v43, 0.0 }
 0x7d9   :  { %1171 = vadd.xlane.f32.xlu0 %v1170_v44  ;;  %3077 = vmatpush3.bf16.msra.mxu0 %v3076_v54 }
 0x7da   :  { %3090 = vmatprep.subr.bf16.mxu0 %v3539_v1 }
 0x866   :  { %v1172_v45 = vpop.xlane.xlu0 %1171 }
 0x867   :  { %v1174_v46 = vmul.f32 0.03125, %v1172_v45 }
 0x869   :  { %v1175_v47 = vsub.f32 %v1167_v43, %v1174_v46  ;;  %v2708_v43 = vld [vmem:[#allocation20] ss:$0 sm:$0xff]  ;;  %v2713_v46 = vld [vmem:[#allocation10 + $0x1] ss:$0 sm:$0xff] }
 0x86b   :  { %v1176_v48 = vmul.f32 %v1175_v47, %v1175_v47 }
 0x86d   :  { %v1177_v49 = vsel %vm329_vm2, %v1176_v48, 0.0 }
 0x86e   :  { %1178 = vadd.xlane.f32.xlu1 %v1177_v49 }
 0x8fb   :  { %v1179_v2 = vpop.xlane.xlu1 %1178 }
 0x8fc   :  { %v1180_v3 = vmul.f32 0.03125, %v1179_v2 }
 0x8fe   :  { %v1181_v4 = vadd.f32 1e-05, %v1180_v3 }
 0x900   :  { %3174 = vrsqrt.f32 %v1181_v4 }
 0x90a   :  { %v3175_v5 = vpop.eup %3174 }
 0x90b   :  { %v1183_v7 = vmul.f32 %v3175_v5, %v1175_v47 }
 0x90d   :  { %v1190_v9 = vmul.f32 %v2701_v6, %v1183_v7 }
 0x90f   :  { %v1197_v10 = vadd.f32 %v2702_v8, %v1190_v9 }
 0x911   :  { %2925 = vmatmul.mubr.msk.f32.vlgmr.msra.gmra.mrb[12].mxu0 %vm329_vm2, %v1197_v10 }
 0x912   :  { %2954 = vmatprep.mubr.msk.f32.mxu0 %vm3538_vm0, %v3537_v0  ;;  %3092 = vmatpush3.bf16.msra.mxu0 %v3091_v33 }
 0x913   :  { %3093 = vmatprep.subr.bf16.mxu0 %v3539_v1 }
 0x916   :  { %3095 = vmatpush3.bf16.msra.mxu0 %v3094_v36 }
 0x917   :  { %2957 = vmatprep.subr.mxu0 %v3537_v0 }
 0x9e4   :  { %v1278_v15 = vpop.f32.mrb[12].mxu0 }
 0x9e5   :  { %v1279_v17 = vadd.f32 %v2703_v14, %v1278_v15  ;;  %v2926_v18 = vpop.f32.mrb[13].mxu0 }
 0x9e7   :  { %v1282_v19 = vmax.f32 %v1279_v17, 0.0 }
 0x9e9   :  { %2944 = vmatmul.mubr.msk.f32.vlgmr.msra.gmra.mrb[10].mxu1 %vm1298_vm5, %v1282_v19 }
 0x9ea   :  { %2969 = vmatprep.mubr.msk.f32.mxu1 %vm3538_vm0, %v3537_v0 }
 0xabc   :  { %v1368_v21 = vpop.f32.mrb[10].mxu1 }
 0xabd   :  { %v1369_v22 = vadd.f32 %v2705_v20, %v1368_v21  ;;  %v2945_v23 = vpop.f32.mrb[11].mxu1 }
 0xabf   :  { %v1372_v24 = vadd.f32 %v1369_v22, %v1197_v10 }
 0xac1   :  { %v1375_v25 = vsel %vm329_vm2, %v1372_v24, 0.0 }
 0xac2   :  { %1376 = vadd.xlane.f32.xlu0 %v1375_v25 }
 0xb4f   :  { %v1377_v26 = vpop.xlane.xlu0 %1376 }
 0xb50   :  { %v1378_v27 = vmul.f32 0.03125, %v1377_v26 }
 0xb52   :  { %v1379_v28 = vsub.f32 %v1372_v24, %v1378_v27 }
 0xb54   :  { %v1380_v29 = vmul.f32 %v1379_v28, %v1379_v28 }
 0xb56   :  { %v1381_v30 = vsel %vm329_vm2, %v1380_v29, 0.0 }
 0xb57   :  { %1382 = vadd.xlane.f32.xlu0 %v1381_v30 }
 0xbe4   :  { %v1383_v37 = vpop.xlane.xlu0 %1382 }
 0xbe5   :  { %v1384_v38 = vmul.f32 0.03125, %v1383_v37 }
 0xbe7   :  { %v1385_v39 = vadd.f32 1e-05, %v1384_v38 }
 0xbe9   :  { %3176 = vrsqrt.f32 %v1385_v39 }
 0xbf3   :  { %v3177_v40 = vpop.eup %3176 }
 0xbf4   :  { %v1387_v42 = vmul.f32 %v3177_v40, %v1379_v28 }
 0xbf6   :  { %v1394_v44 = vmul.f32 %v2707_v41, %v1387_v42 }
 0xbf8   :  { %v4046_v45 = vadd.f32 %v2708_v43, %v1394_v44 }
 0xbfa   :  { %2955 = vmatmul.mubr.msk.f32.vlgmr.msra.gmra.mrb[14].mxu0 %vm329_vm2, %v4046_v45 }
 0xbfb   :  { %2959 = vmatprep.mubr.msk.f32.mxu0 %vm3538_vm0, %v3537_v0 }
 0xccd   :  { %v1484_v47 = vpop.f32.mrb[14].mxu0 }
 0xcce   :  { %v1485_v48 = vadd.f32 %v2713_v46, %v1484_v47  ;;  %v2956_v49 = vpop.f32.mrb[15].mxu0 }
 0xccf   :  { %v2728_v49 = vld [vmem:[%s4242_s6 + $0x28] sm:$0xff] }
 0xcd0   :  { %1491 = vrot.lane.b32.xlu0 %v1485_v48, %s3543_s27  ;;  %1489 = vrot.lane.b32.xlu1 %v1485_v48, %s3541_s29 }
 0xcd4   :  { %1493 = vrot.lane.b32.xlu1 %v1485_v48, %s3540_s7 }
 0xcd8   :  { %1495 = vrot.lane.b32.xlu1 %v1485_v48, %s3542_s25 }
 0xd42   :  { %v4056_v50 = vpop.permute.xlu0 %1491  ;;  %v1490_v51 = vpop.permute.xlu1 %1489 }
 0xd43   :  { %1647 = vrot.lane.b32.xlu1 %v4056_v50, %s3542_s25  ;;  %1571 = vrot.lane.b32.xlu0 %v1490_v51, %s3542_s25 }
 0xd46   :  { %v4061_v52 = vpop.permute.xlu1 %1493 }
 0xd47   :  { %1723 = vrot.lane.b32.xlu0 %v4061_v52, %s3542_s25 }
 0xd4a   :  { %v1496_v16 = vpop.permute.xlu1 %1495 }
 0xd4b   :  { %2958 = vmatpush3.xpose.msk.msra.mxu0 %vm241_vm1, %v1496_v16  ;;  %v2729_v16 = vld [vmem:[%s4242_s6 + $0x30] sm:$0xff] }
 0xd4c   :  { %2962 = vmatprep.subr.mxu0 %v3537_v0 }
 0xd4e   :  { %2960 = vmatmul.mubr.msk.f32.vlgmr.msra.gmra.mrb[16].mxu0 %vm241_vm1, %v1485_v48 }
 0xd4f   :  { %2964 = vmatprep.mubr.msk.f32.mxu0 %vm3538_vm0, %v3537_v0 }
 0xdb5   :  { %v1572_v53 = vpop.permute.xlu0 %1571  ;;  %v1648_v54 = vpop.permute.xlu1 %1647 }
 0xdb6   :  { %2963 = vmatpush3.xpose.msk.msra.mxu0 %vm241_vm1, %v1572_v53  ;;  %2968 = vmatpush3.xpose.msk.msra.mxu1 %vm241_vm1, %v1648_v54  ;;  %v2730_v53 = vld [vmem:[%s4242_s6 + $0x38] sm:$0xff] }
 0xdb7   :  { %2972 = vmatprep.subr.mxu0 %v3537_v0  ;;  %2977 = vmatprep.subr.mxu1 %v3537_v0  ;;  %v3100_v54 = vpack.c.bf16 %v2730_v53, %v2729_v16 }
 0xdb9   :  { %v1724_v55 = vpop.permute.xlu0 %1723  ;;  %2965 = vmatmul.mubr.msk.f32.vlgmr.msra.gmra.mrb[18].mxu0 %vm241_vm1, %v1490_v51  ;;  %2970 = vmatmul.mubr.msk.f32.vlgmr.msra.gmra.mrb[12].mxu1 %vm241_vm1, %v4056_v50 }
 0xdba   :  { %2973 = vmatpush3.xpose.msk.msra.mxu0 %vm241_vm1, %v1724_v55  ;;  %2974 = vmatprep.mubr.msk.f32.mxu0 %vm3538_vm0, %v3537_v0 }
 0xdbb   :  { %2982 = vmatprep.subr.mxu0 %v3537_v0  ;;  %2979 = vmatprep.mubr.msk.f32.mxu1 %vm3538_vm0, %v3537_v0 }
 0xdbd   :  { %2975 = vmatmul.mubr.msk.f32.vlgmr.msra.gmra.mrb[20].mxu0 %vm241_vm1, %v4061_v52 }
 0xdbe   :  { %2984 = vmatprep.mubr.msk.f32.mxu0 %vm3538_vm0, %v3537_v0 }
 0xe21   :  { %v1567_v56 = vpop.f32.mrb[16].mxu0 }
 0xe22   :  { %v1799_v57 = vmul.f32 0.35355338, %v1567_v56  ;;  %v2961_v58 = vpop.f32.mrb[17].mxu0 }
 0xe24   :  { %v1803_v59 = vsel %vm241_vm1, %v1799_v57, -inf }
 0xe25   :  { %1804 = vmax.xlane.f32.xlu1 %v1803_v59 }
 0xe8c   :  { %v1643_v60 = vpop.f32.mrb[18].mxu0  ;;  %v1719_v61 = vpop.f32.mrb[12].mxu1 }
 0xe8d   :  { %v1800_v62 = vmul.f32 0.35355338, %v1643_v60  ;;  %v2966_v63 = vpop.f32.mrb[19].mxu0  ;;  %v2971_v2 = vpop.f32.mrb[13].mxu1  ;;  %v1801_v3 = vmul.f32 0.35355338, %v1719_v61 }
 0xe8f   :  { %v1806_v4 = vsel %vm241_vm1, %v1800_v62, -inf  ;;  %v1809_v8 = vsel %vm241_vm1, %v1801_v3, -inf }
 0xe90   :  { %1807 = vmax.xlane.f32.xlu0 %v1806_v4  ;;  %v1795_v5 = vpop.f32.mrb[20].mxu0 }
 0xe91   :  { %v1802_v6 = vmul.f32 0.35355338, %v1795_v5  ;;  %v2976_v7 = vpop.f32.mrb[21].mxu0  ;;  %v2731_v5 = vld [vmem:[#allocation11 + $0x1] ss:$0 sm:$0xff] }
 0xe93   :  { %v1812_v9 = vsel %vm241_vm1, %v1802_v6, -inf }
 0xe94   :  { %1810 = vmax.xlane.f32.xlu0 %v1809_v8  ;;  %1813 = vmax.xlane.f32.xlu1 %v1812_v9 }
 0xea5   :  { %1923 = vrot.lane.b32.xlu1 %v1490_v51, %s3544_s30 }
 0xeaa   :  { %1847 = vrot.lane.b32.xlu0 %v1485_v48, %s3544_s30  ;;  %v2727_v48 = vld [vmem:[%s4242_s6 + $0x20] sm:$0xff] }
 0xeb2   :  { %v1805_v10 = vpop.xlane.xlu1 %1804 }
 0xeb3   :  { %v1815_v11 = vsub.f32 %v1799_v57, %v1805_v10 }
 0xeb5   :  { %v1819_v12 = vmul.f32 1.442695, %v1815_v11 }
 0xeb7   :  { %3178 = vpow2.f32 %v1819_v12 }
 0xec1   :  { %v3179_v13 = vpop.eup %3178 }
 0xec2   :  { %v1827_v14 = vsel %vm241_vm1, %v3179_v13, 0.0 }
 0xec9   :  { %1828 = vadd.xlane.f32.xlu0 %v1827_v14 }
 0xf1d   :  { %v1808_v15 = vpop.xlane.xlu0 %1807 }
 0xf1e   :  { %v1816_v17 = vsub.f32 %v1800_v62, %v1808_v15 }
 0xf20   :  { %v1821_v18 = vmul.f32 1.442695, %v1816_v17  ;;  %v2735_v17 = vld [vmem:[%s4246_s10 + $0x20] sm:$0xff] }
 0xf21   :  { %v1811_v19 = vpop.xlane.xlu0 %1810  ;;  %v1814_v20 = vpop.xlane.xlu1 %1813 }
 0xf22   :  { %3180 = vpow2.f32 %v1821_v18  ;;  %v1817_v21 = vsub.f32 %v1801_v3, %v1811_v19  ;;  %v1818_v22 = vsub.f32 %v1802_v6, %v1814_v20  ;;  %v2736_v18 = vld [vmem:[%s4246_s10 + $0x28] sm:$0xff]  ;;  %v2738_v20 = vld [vmem:[%s4246_s10 + $0x38] sm:$0xff] }
 0xf23   :  { %v3103_v19 = vpack.c.bf16 %v2736_v18, %v2735_v17  ;;  %v2580_v17 = vld [vmem:[%s4254_s18 + $0x18] sm:$0xff] }
 0xf24   :  { %v1823_v23 = vmul.f32 1.442695, %v1817_v21  ;;  %v1825_v24 = vmul.f32 1.442695, %v1818_v22  ;;  %v2741_v22 = vld [vmem:[%s4248_s12 + $0x40] sm:$0xff] }
 0xf25   :  { %v1848_v25 = vpop.permute.xlu0 %1847  ;;  %v1924_v26 = vpop.permute.xlu1 %1923 }
 0xf26   :  { %3182 = vpow2.f32 %v1823_v23  ;;  %2978 = vmatpush3.msra.mxu1 %v1848_v25  ;;  %2983 = vmatpush3.msra.mxu0 %v1924_v26  ;;  %v2742_v23 = vld [vmem:[%s4248_s12 + $0x48] sm:$0xff]  ;;  %v2744_v26 = vld [vmem:[%s4248_s12 + $0x58] sm:$0xff] }
 0xf27   :  { %3184 = vpow2.f32 %v1825_v24  ;;  %2987 = vmatprep.subr.mxu1 %v3537_v0  ;;  %2992 = vmatprep.subr.mxu0 %v3537_v0  ;;  %v2743_v24 = vld [vmem:[%s4248_s12 + $0x50] sm:$0xff]  ;;  %v3109_v25 = vpack.c.bf16 %v2742_v23, %v2741_v22 }
 0xf2c   :  { %v3181_v27 = vpop.eup %3180 }
 0xf2d   :  { %v1830_v28 = vsel %vm241_vm1, %v3181_v27, 0.0 }
 0xf2e   :  { %1831 = vadd.xlane.f32.xlu1 %v1830_v28  ;;  %v2745_v28 = vld [vmem:[%s4248_s12 + $0x60] sm:$0xff] }
 0xf30   :  { %v3183_v29 = vpop.eup %3182 }
 0xf31   :  { %v3185_v30 = vpop.eup %3184  ;;  %v1833_v31 = vsel %vm241_vm1, %v3183_v29, 0.0 }
 0xf32   :  { %1834 = vadd.xlane.f32.xlu0 %v1833_v31  ;;  %v1836_v32 = vsel %vm241_vm1, %v3185_v30, 0.0 }
 0xf33   :  { %1837 = vadd.xlane.f32.xlu1 %v1836_v32 }
 0xf44   :  { %1999 = vrot.lane.b32.xlu1 %v4056_v50, %s3544_s30  ;;  %v3097_v50 = vpack.c.bf16 %v2728_v49, %v2727_v48  ;;  %v2749_v49 = vld [vmem:[#allocation17 + $0x1] ss:$0 sm:$0xff] }
 0xf48   :  { %2075 = vrot.lane.b32.xlu0 %v4061_v52, %s3544_s30 }
 0xf56   :  { %v1829_v33 = vpop.xlane.xlu0 %1828 }
 0xf57   :  { %3186 = vrcp.f32 %v1829_v33 }
 0xf61   :  { %v3187_v34 = vpop.eup %3186 }
 0xf62   :  { %v1840_v35 = vmul.f32 %v3187_v34, %v3179_v13 }
 0xf64   :  { %2980 = vmatmul.mubr.msk.f32.vlgmr.msra.gmra.mrb[14].mxu1 %vm241_vm1, %v1840_v35  ;;  %v2733_v35 = vld [vmem:[#allocation13 + $0x1] ss:$0 sm:$0xff] }
 0xf65   :  { %2989 = vmatprep.mubr.msk.f32.mxu1 %vm3538_vm0, %v3537_v0 }
 0xfbb   :  { %v1832_v36 = vpop.xlane.xlu1 %1831 }
 0xfbc   :  { %3188 = vrcp.f32 %v1832_v36 }
 0xfbf   :  { %v1835_v37 = vpop.xlane.xlu0 %1834 }
 0xfc0   :  { %3190 = vrcp.f32 %v1835_v37  ;;  %v1838_v38 = vpop.xlane.xlu1 %1837  ;;  %v2734_v37 = vld [vmem:[#allocation14 + $0x1] ss:$0 sm:$0xff] }
 0xfc1   :  { %3192 = vrcp.f32 %v1838_v38 }
 0xfc3   :  { %v2076_v42 = vpop.permute.xlu0 %2075 }
 0xfc4   :  { %v2000_v39 = vpop.permute.xlu1 %1999 }
 0xfc5   :  { %2988 = vmatpush3.msra.mxu1 %v2000_v39 }
 0xfc6   :  { %v3189_v40 = vpop.eup %3188  ;;  %3096 = vmatprep.subr.bf16.mxu1 %v3539_v1 }
 0xfc7   :  { %v1842_v41 = vmul.f32 %v3189_v40, %v3181_v27  ;;  %v3112_v27 = vpack.c.bf16 %v2744_v26, %v2743_v24  ;;  %v2747_v40 = vld [vmem:[%s4248_s12 + $0x70] sm:$0xff] }
 0xfc9   :  { %2985 = vmatmul.mubr.msk.f32.vlgmr.msra.gmra.mrb[22].mxu0 %vm241_vm1, %v1842_v41  ;;  %v2748_v41 = vld [vmem:[%s4248_s12 + $0x78] sm:$0xff] }
 0xfca   :  { %v3191_v43 = vpop.eup %3190  ;;  %2993 = vmatpush3.msra.mxu0 %v2076_v42  ;;  %2994 = vmatprep.mubr.msk.f32.mxu0 %vm3538_vm0, %v3537_v0  ;;  %v3118_v42 = vpack.c.bf16 %v2748_v41, %v2747_v40 }
 0xfcb   :  { %v3193_v44 = vpop.eup %3192  ;;  %v1844_v46 = vmul.f32 %v3191_v43, %v3183_v29  ;;  %3102 = vmatprep.subr.bf16.mxu0 %v3539_v1  ;;  %v2746_v29 = vld [vmem:[%s4248_s12 + $0x68] sm:$0xff]  ;;  %v2739_v43 = vld [vmem:[#allocation16 + $0x1] ss:$0 sm:$0xff] }
 0xfcc   :  { %v1846_v47 = vmul.f32 %v3193_v44, %v3185_v30  ;;  %v3115_v30 = vpack.c.bf16 %v2746_v29, %v2745_v28 }
 0xfcd   :  { %2990 = vmatmul.mubr.msk.f32.vlgmr.msra.gmra.mrb[16].mxu1 %vm241_vm1, %v1844_v46 }
 0xfce   :  { %2995 = vmatmul.mubr.msk.f32.vlgmr.msra.gmra.mrb[24].mxu0 %vm241_vm1, %v1846_v47  ;;  %3005 = vmatprep.mubr.msk.f32.mxu1 %vm3538_vm0, %v3537_v0 }
 0xfcf   :  { %3016 = vmatprep.mubr.msk.f32.mxu0 %vm3538_vm0, %v3537_v0  ;;  %3098 = vmatpush3.bf16.msra.mxu1 %v3097_v50 }
 0xfd0   :  { %3099 = vmatprep.subr.bf16.mxu1 %v3539_v1  ;;  %3104 = vmatpush3.bf16.msra.mxu0 %v3103_v19  ;;  %v2753_v19 = vld [vmem:[#allocation22] ss:$0 sm:$0xff] }
 0xfd1   :  { %3105 = vmatprep.subr.bf16.mxu0 %v3539_v1 }
 0xfd3   :  { %3101 = vmatpush3.bf16.msra.mxu1 %v3100_v54 }
 0xfd4   :  { %3108 = vmatprep.subr.bf16.mxu1 %v3539_v1 }
0x1037   :  { %v1919_v51 = vpop.f32.mrb[14].mxu1 }
0x1038   :  { %v2981_v52 = vpop.f32.mrb[15].mxu1 }
0x109c   :  { %v1995_v55 = vpop.f32.mrb[22].mxu0 }
0x109d   :  { %2152 = vrot.lane.b32.xlu1 %v1995_v55, %s3545_s0  ;;  %v2986_v56 = vpop.f32.mrb[23].mxu0 }
0x10a0   :  { %v2071_v57 = vpop.f32.mrb[16].mxu1 }
0x10a1   :  { %v2147_v58 = vpop.f32.mrb[24].mxu0  ;;  %2156 = vrot.lane.b32.xlu0 %v2071_v57, %s3526_s2  ;;  %v2991_v59 = vpop.f32.mrb[17].mxu1 }
0x10a2   :  { %2160 = vrot.lane.b32.xlu1 %v2147_v58, %s3546_s17  ;;  %v2996_v60 = vpop.f32.mrb[25].mxu0  ;;  %v2493_v59 = vld [vmem:[%s4252_s16] sm:$0xff] }
0x10a3   :  { %v2494_v60 = vld [vmem:[%s4252_s16 + $0x8] sm:$0xff] }
0x110f   :  { %v2153_v61 = vpop.permute.xlu1 %2152 }
0x1110   :  { %v2163_v62 = vsel %vm241_vm1, %v1919_v51, %v2153_v61  ;;  %v3121_v61 = vpack.c.bf16 %v2494_v60, %v2493_v59 }
0x1113   :  { %v2157_v63 = vpop.permute.xlu0 %2156 }
0x1114   :  { %v2164_v2 = vsel %vm1079_vm3, %v2163_v62, %v2157_v63  ;;  %v2161_v3 = vpop.permute.xlu1 %2160  ;;  %v2495_v62 = vld [vmem:[%s4252_s16 + $0x10] sm:$0xff]  ;;  %v2496_v63 = vld [vmem:[%s4252_s16 + $0x18] sm:$0xff] }
0x1115   :  { %v2165_v4 = vsel %vm1081_vm4, %v2164_v2, %v2161_v3  ;;  %v3124_v2 = vpack.c.bf16 %v2496_v63, %v2495_v62 }
0x1116   :  { %3006 = vmatmul.mubr.msk.f32.vlgmr.msra.gmra.mrb[18].mxu1 %vm329_vm2, %v2165_v4 }
0x1117   :  { %3035 = vmatprep.mubr.msk.f32.mxu1 %vm3538_vm0, %v3537_v0  ;;  %3110 = vmatpush3.bf16.msra.mxu1 %v3109_v25 }
0x1118   :  { %3111 = vmatprep.subr.bf16.mxu1 %v3539_v1 }
0x111b   :  { %3113 = vmatpush3.bf16.msra.mxu1 %v3112_v27 }
0x111c   :  { %3114 = vmatprep.subr.bf16.mxu1 %v3539_v1 }
0x111f   :  { %3116 = vmatpush3.bf16.msra.mxu1 %v3115_v30 }
0x1120   :  { %3117 = vmatprep.subr.bf16.mxu1 %v3539_v1 }
0x1123   :  { %3119 = vmatpush3.bf16.msra.mxu1 %v3118_v42 }
0x11e9   :  { %v2248_v6 = vpop.f32.mrb[18].mxu1 }
0x11ea   :  { %v2249_v7 = vadd.f32 %v2731_v5, %v2248_v6  ;;  %v3007_v8 = vpop.f32.mrb[19].mxu1 }
0x11ec   :  { %v2252_v9 = vadd.f32 %v2249_v7, %v4046_v45  ;;  %v2737_v45 = vld [vmem:[%s4246_s10 + $0x30] sm:$0xff]  ;;  %v2751_v7 = vld [vmem:[#allocation19 + $0x1] ss:$0 sm:$0xff] }
0x11ed   :  { %v3106_v21 = vpack.c.bf16 %v2738_v20, %v2737_v45 }
0x11ee   :  { %v2257_v10 = vsel %vm329_vm2, %v2252_v9, 0.0 }
0x11ef   :  { %2258 = vadd.xlane.f32.xlu0 %v2257_v10  ;;  %3107 = vmatpush3.bf16.msra.mxu0 %v3106_v21  ;;  %v2578_v10 = vld [vmem:[%s4254_s18 + $0x8] sm:$0xff] }
0x11f0   :  { %3120 = vmatprep.subr.bf16.mxu0 %v3539_v1 }
0x127c   :  { %v2259_v11 = vpop.xlane.xlu0 %2258 }
0x127d   :  { %v2260_v12 = vmul.f32 0.03125, %v2259_v11  ;;  %v2752_v11 = vld [vmem:[#allocation20 + $0x1] ss:$0 sm:$0xff] }
0x127f   :  { %v2261_v13 = vsub.f32 %v2252_v9, %v2260_v12  ;;  %v2577_v9 = vld [vmem:[%s4254_s18] sm:$0xff] }
0x1281   :  { %v2262_v14 = vmul.f32 %v2261_v13, %v2261_v13 }
0x1283   :  { %v2263_v15 = vsel %vm329_vm2, %v2262_v14, 0.0 }
0x1284   :  { %2264 = vadd.xlane.f32.xlu1 %v2263_v15  ;;  %v2579_v15 = vld [vmem:[%s4254_s18 + $0x10] sm:$0xff]  ;;  %s3484_s18 = scalar_lea.vmem %s2669_s13, 128 }
0x1285   :  { %v3130_v18 = vpack.c.bf16 %v2580_v17, %v2579_v15  ;;  %p3485_p6 = scmp.ne.s32.totalorder %s2669_s13, %s3484_s18  ;;  %p3490_p8 = scmp.lt.s32.totalorder %s3484_s18, %s3484_s18 }
0x1287   :  { %p3491_p9 = por %p3490_p8, %p3489_p7 }
0x1289   :  { %p3492_p10 = pnand %p3491_p9, %p3485_p6 }
0x1311   :  { %v2265_v31 = vpop.xlane.xlu1 %2264 }
0x1312   :  { %v2266_v32 = vmul.f32 0.03125, %v2265_v31 }
0x1314   :  { %v2267_v33 = vadd.f32 1e-05, %v2266_v32 }
0x1316   :  { %3194 = vrsqrt.f32 %v2267_v33 }
0x1320   :  { %v3195_v34 = vpop.eup %3194 }
0x1321   :  { %v2269_v36 = vmul.f32 %v3195_v34, %v2261_v13  ;;  %v3127_v13 = vpack.c.bf16 %v2578_v10, %v2577_v9 }
0x1323   :  { %v2276_v38 = vmul.f32 %v2733_v35, %v2269_v36 }
0x1325   :  { %v2283_v39 = vadd.f32 %v2734_v37, %v2276_v38 }
0x1327   :  { %3017 = vmatmul.mubr.msk.f32.vlgmr.msra.gmra.mrb[26].mxu0 %vm329_vm2, %v2283_v39 }
0x1328   :  { %3046 = vmatprep.mubr.msk.f32.mxu0 %vm3538_vm0, %v3537_v0  ;;  %3122 = vmatpush3.bf16.msra.mxu0 %v3121_v61 }
0x1329   :  { %3123 = vmatprep.subr.bf16.mxu0 %v3539_v1 }
0x132c   :  { %3125 = vmatpush3.bf16.msra.mxu0 %v3124_v2 }
0x132d   :  { %3126 = vmatprep.subr.bf16.mxu0 %v3539_v1 }
0x13fa   :  { %v2366_v44 = vpop.f32.mrb[26].mxu0 }
0x13fb   :  { %v2367_v46 = vadd.f32 %v2739_v43, %v2366_v44  ;;  %v3018_v47 = vpop.f32.mrb[27].mxu0 }
0x13fd   :  { %v2370_v48 = vmax.f32 %v2367_v46, 0.0 }
0x13ff   :  { %3036 = vmatmul.mubr.msk.f32.vlgmr.msra.gmra.mrb[20].mxu1 %vm1298_vm5, %v2370_v48 }
0x14d2   :  { %v2457_v50 = vpop.f32.mrb[20].mxu1 }
0x14d3   :  { %v2458_v51 = vadd.f32 %v2749_v49, %v2457_v50  ;;  %v3037_v52 = vpop.f32.mrb[21].mxu1 }
0x14d5   :  { %v2461_v16 = vadd.f32 %v2458_v51, %v2283_v39 }
0x14d7   :  { %v2466_v53 = vsel %vm329_vm2, %v2461_v16, 0.0 }
0x14d8   :  { %2467 = vadd.xlane.f32.xlu0 %v2466_v53 }
0x1565   :  { %v2468_v54 = vpop.xlane.xlu0 %2467 }
0x1566   :  { %v2469_v55 = vmul.f32 0.03125, %v2468_v54 }
0x1568   :  { %v2470_v56 = vsub.f32 %v2461_v16, %v2469_v55 }
0x156a   :  { %v2471_v57 = vmul.f32 %v2470_v56, %v2470_v56 }
0x156c   :  { %v2472_v58 = vsel %vm329_vm2, %v2471_v57, 0.0 }
0x156d   :  { %2473 = vadd.xlane.f32.xlu0 %v2472_v58 }
0x15fa   :  { %v2474_v3 = vpop.xlane.xlu0 %2473 }
0x15fb   :  { %v2475_v4 = vmul.f32 0.03125, %v2474_v3 }
0x15fd   :  { %v2476_v5 = vadd.f32 1e-05, %v2475_v4 }
0x15ff   :  { %3196 = vrsqrt.f32 %v2476_v5 }
0x1609   :  { %v3197_v6 = vpop.eup %3196 }
0x160a   :  { %v2478_v8 = vmul.f32 %v3197_v6, %v2470_v56 }
0x160c   :  { %v2485_v12 = vmul.f32 %v2751_v7, %v2478_v8 }
0x160e   :  { %v2492_v14 = vadd.f32 %v2752_v11, %v2485_v12 }
0x1610   :  { %3047 = vmatmul.mubr.msk.f32.vlgmr.msra.gmra.mrb[28].mxu0 %vm329_vm2, %v2492_v14 }
0x1611   :  { %3128 = vmatpush3.bf16.msra.mxu0 %v3127_v13  ;;  %3057 = vmatprep.mubr.msk.f32.mxu0 %vm3538_vm0, %v3537_v0  ;;  %v2755_v0 = vld [vmem:[%s4255_s19] ss:$0 sm:$0xff] }
0x1612   :  { %3129 = vmatprep.subr.bf16.mxu0 %v3539_v1 }
0x1615   :  { %3131 = vmatpush3.bf16.msra.mxu0 %v3130_v18 }
0x16e3   :  { %v2573_v45 = vpop.f32.mrb[28].mxu0 }
0x16e4   :  { %v2574_v20 = vadd.f32 %v2753_v19, %v2573_v45  ;;  %v3048_v21 = vpop.f32.mrb[29].mxu0 }
0x16e6   :  { %3058 = vmatmul.mubr.msk.f32.vlgmr.msra.gmra.mrb[30].mxu0 %vm329_vm2, %v2574_v20 }
0x17b9   :  { %v2657_v1 = vpop.f32.mrb[30].mxu0 }
0x17ba   :  { %v2658_v22 = vadd.f32 %v2755_v0, %v2657_v1  ;;  %v3059_v23 = vpop.f32.mrb[31].mxu0 }
0x17bc   :  { %2661 = vst [vmem:[#allocation23] sm:$0xff] %v2658_v22 }
0x17bd   :  { %3495 = shalt.err (!%p3492_p10)
}
0x17be   :  { %s3496_s3 = scalar_lea.hbm %s4256_s20, 128 }
0x17bf   :  { %p3497_p11 = scmp.ne.s32.totalorder %s4256_s20, %s3496_s3  ;;  %p3500_p12 = scmp.lt.u32.totalorder %s3496_s3, %s4256_s20 }
0x17c1   :  { %p3502_p13 = pnand %p3500_p12, %p3497_p11 }
0x17c3   :  { %3505 = shalt.err (!%p3502_p13)
}
0x17c4   :  { %2671 = dma.vmem_to_hbm [thread:$0]  %s2669_s13, 128, %s4256_s20, [#allocation4]  }
0x17c5   :  { %3520 = dma.done.wait [#allocation4], 128  }
0x17c6   :  { %3521 = vsyncadd [#allocation4], 4294967168 }
0x17c7   :  { %2675 = vsyncpa [#allocation3], 1 }
0x17c8   :  { %2676 = vsyncpa [#allocation6], 1 }
0x17c9   :  { %2677 = vsyncpa [#allocation9], 1 }
0x17ca   :  { %2678 = vsyncpa [#allocation12], 1 }
0x17cb   :  { %2679 = vsyncpa [#allocation15], 1 }
0x17cc   :  { %2680 = vsyncpa [#allocation18], 1 }
0x17cd   :  { %2681 = vsyncpa [#allocation21], 1 }
0x17ce   :  { %2682 = vsyncpa [#allocation4], 1 }

</bundles_post_ra>
